<compile_context>
chip_gen: v7x
topology: tpu7x:2x2x1
jax: 0.10.0
libtpu: 0.0.40
codegen_flags: <defaults>
</compile_context>

<pallas_src>
import functools

import jax
import jax.numpy as jnp
from jax.experimental import pallas as pl
from jax.experimental.pallas import tpu as pltpu


# ----------------------------------------------------------------------------
# Fused multi-step kernel.
# One grid step = one batch tile of block_b items, ALL num_steps steps.
# ----------------------------------------------------------------------------
def _gfc_fused_kernel(qwh_ref, mask_ref, ws_ref, bs_ref, wh_ref, bh_ref,
                      wr_ref, br_ref, out_ref, ctx_buf, *, num_steps: int):
    qwh = qwh_ref[...]            # (Bt, seq, dim)   original q_word_h
    mask3 = mask_ref[...]         # (Bt, 1, seq)     attention mask (float)
    bt, seq, dim = qwh.shape
    rows = bt * seq
    mask2 = mask3[:, 0, :]        # (Bt, seq)

    wh = wh_ref[...]              # (dim, dim)  highway weight
    bh = bh_ref[...]              # (1, dim)
    wr = wr_ref[...]              # (dim, num_rel)
    br = br_ref[...]              # (1, num_rel)
    num_rel = wr.shape[1]

    base_c = num_steps * seq              # ctx_h offset in packed slab
    base_r = num_steps * (seq + dim)      # rel offset in packed slab

    hop = qwh                     # q_word_h_hop
    prev = None                   # q_word_h_dist_ctx[-1]

    for t in range(num_steps):    # statically unrolled; weights stay resident
        # h_key = step_encoders[t](q_word_h_hop); rows flattened -> dense MXU tile
        h_key = (jnp.dot(hop.reshape(rows, dim), ws_ref[t],
                         preferred_element_type=jnp.float32)
                 + bs_ref[t]).reshape(bt, seq, dim)

        # logits[b,i,j] = <qwh[b,i], h_key[b,j]>  (== matmul(h_key, qwh^T)^T)
        logits = jnp.einsum('bid,bjd->bij', qwh, h_key,
                            preferred_element_type=jnp.float32)

        # softmax over keys, mask, renormalize (matches torch ordering)
        logits = logits - jnp.max(logits, axis=-1, keepdims=True)
        e = jnp.exp(logits)
        q_dist = e / jnp.sum(e, axis=-1, keepdims=True)
        q_dist = q_dist * mask3
        q_dist = q_dist / (jnp.sum(q_dist, axis=-1, keepdims=True) + 1e-6)

        # hop context over the PRE-update hop state
        hop_ctx = jnp.einsum('bij,bjd->bid', q_dist, hop,
                             preferred_element_type=jnp.float32)

        if t == 0:
            new_hop = qwh + hop_ctx
            new_prev = hop_ctx
        else:
            prev2d = prev.reshape(rows, dim)
            z2d = jax.nn.sigmoid(
                jnp.dot(prev2d, wh, preferred_element_type=jnp.float32) + bh)
            zp = (z2d * prev2d).reshape(bt, seq, dim)
            new_hop = qwh + hop_ctx + zp
            new_prev = hop_ctx + zp
        hop, prev = new_hop, new_prev

        # word attention: sum over query positions, softmax, mask, renormalize
        watt = jnp.sum(q_dist, axis=1)                     # (Bt, seq)
        watt = watt - jnp.max(watt, axis=-1, keepdims=True)
        we = jnp.exp(watt)
        watt = we / jnp.sum(we, axis=-1, keepdims=True)
        watt = watt * mask2
        watt = watt / (jnp.sum(watt, axis=-1, keepdims=True) + 1e-6)

        # ctx_h = sum_s watt[b,s] * hop_post[b,s,:] -- VPU mul + cross-sublane
        # reduce instead of a 1-row MXU matmul (POST-update hop, as in torch).
        ctx = jnp.sum(watt[:, :, None] * hop, axis=1)      # (Bt, dim)

        # stage per-step pieces into the packed output slab / ctx scratch
        out_ref[:, 0, t * seq:(t + 1) * seq] = watt
        out_ref[:, 0, base_c + t * dim:base_c + (t + 1) * dim] = ctx
        ctx_buf[t * bt:(t + 1) * bt, :] = ctx

    # Deferred relation classifier: ONE (num_steps*Bt, dim) @ (dim, num_rel)
    # matmul + sigmoid for all steps at once (M multiplied by num_steps).
    ctx_flat = ctx_buf[...]
    rel_flat = jax.nn.sigmoid(
        jnp.dot(ctx_flat, wr, preferred_element_type=jnp.float32) + br)
    for t in range(num_steps):
        out_ref[:, 0, base_r + t * num_rel:base_r + (t + 1) * num_rel] = (
            rel_flat[t * bt:(t + 1) * bt, :])


# ----------------------------------------------------------------------------
# Generation-aware tiling heuristics.
# ----------------------------------------------------------------------------
def _vmem_capacity_bytes():
    """Best-effort per-core VMEM capacity; conservative (v7x) fallback."""
    try:
        info = pltpu.get_tpu_info()
        cap = getattr(info, "vmem_capacity_bytes", None)
        if cap:
            return int(cap)
    except Exception:
        pass
    return 64 << 20


def _num_tensorcores():
    """Best-effort TensorCores-per-chip (v7x has 2, v5e/v6e have 1)."""
    try:
        dev = jax.devices()[0]
        for attr in ("num_cores", "core_count"):
            n = getattr(dev, attr, None)
            if n:
                return int(n)
        if "v7" in str(getattr(dev, "device_kind", "")).lower():
            return 2
    except Exception:
        pass
    return 1


def _vmem_estimate(block_b, seq, dim, num_steps, num_rel):
    """Rough f32 VMEM footprint of one grid step (incl. default 2x buffering)."""
    f32 = 4
    weights = (num_steps * (dim * dim + dim)
               + dim * dim + dim + dim * num_rel + num_rel)
    in_io = block_b * (seq * dim + seq)
    out_io = block_b * num_steps * (seq + dim + num_rel)
    working = (block_b * (8 * seq * dim + 3 * seq * seq)
               + num_steps * block_b * dim)
    return f32 * (2 * weights + 2 * in_io + 2 * out_io + working)


def _pick_block_b(bsz, seq, dim, num_steps, num_rel, vmem_budget, n_cores):
    divisors = [d for d in range(1, bsz + 1) if bsz % d == 0]
    fitting = [d for d in divisors
               if _vmem_estimate(d, seq, dim, num_steps, num_rel) <= vmem_budget]
    block_b = max(fitting) if fitting else 1
    # Multi-TensorCore parts (v7x): keep >= 2 grid points so both cores get
    # work, but only when the halved tile still feeds the MXU (>= 256 rows).
    if n_cores >= 2 and bsz >= 2:
        half = max(d for d in divisors if d <= bsz // 2)
        if half * seq >= 256:
            block_b = min(block_b, half)
    return block_b


# ----------------------------------------------------------------------------
# Wrapper around the fused kernel.
# ----------------------------------------------------------------------------
def gfc_fused_steps(q_word_h, mask3, w_step, b_step, w_hw, b_hw, w_rel, b_rel,
                    *, block_b=None):
    bsz, seq, dim = q_word_h.shape
    num_steps = w_step.shape[0]
    num_rel = w_rel.shape[1]
    total = num_steps * (seq + dim + num_rel)

    vmem_cap = _vmem_capacity_bytes()
    if block_b is None:
        block_b = _pick_block_b(bsz, seq, dim, num_steps, num_rel,
                                int(0.70 * vmem_cap), _num_tensorcores())
    assert bsz % block_b == 0, "batch must be divisible by block_b"
    grid = (bsz // block_b,)

    est = _vmem_estimate(block_b, seq, dim, num_steps, num_rel)
    vmem_limit = int(min(max(2 * est, 32 << 20), int(0.85 * vmem_cap)))

    # Advisory cost estimate so XLA schedules this kernel against surrounding ops.
    flops = int(
        num_steps * 2 * bsz * seq * dim * dim                 # step encoders
        + num_steps * 2 * 2 * bsz * seq * seq * dim           # q_logits + hop_ctx
        + max(num_steps - 1, 0) * 2 * bsz * seq * dim * dim   # highway
        + 2 * bsz * num_steps * dim * num_rel                 # rel classifier
        + num_steps * 2 * bsz * seq * dim)                    # ctx weighted sum
    transcendentals = int(
        num_steps * bsz * (seq * seq + seq)                   # softmax exps
        + max(num_steps - 1, 0) * bsz * seq * dim             # highway sigmoid
        + bsz * num_steps * num_rel)                          # rel sigmoid
    bytes_accessed = 4 * int(
        bsz * (seq * dim + seq)
        + num_steps * (dim * dim + dim) + dim * dim + dim
        + dim * num_rel + num_rel
        + bsz * total)

    kernel = functools.partial(_gfc_fused_kernel, num_steps=num_steps)

    in_specs = [
        pl.BlockSpec((block_b, seq, dim), lambda b: (b, 0, 0)),    # q_word_h
        pl.BlockSpec((block_b, 1, seq), lambda b: (b, 0, 0)),      # mask
        pl.BlockSpec((num_steps, dim, dim), lambda b: (0, 0, 0)),  # w_step (stacked)
        pl.BlockSpec((num_steps, 1, dim), lambda b: (0, 0, 0)),    # b_step (stacked)
        pl.BlockSpec((dim, dim), lambda b: (0, 0)),                # w_hw
        pl.BlockSpec((1, dim), lambda b: (0, 0)),                  # b_hw
        pl.BlockSpec((dim, num_rel), lambda b: (0, 0)),            # w_rel
        pl.BlockSpec((1, num_rel), lambda b: (0, 0)),              # b_rel
    ]
    out_specs = pl.BlockSpec((block_b, 1, total), lambda b: (b, 0, 0))

    packed = pl.pallas_call(
        kernel,
        out_shape=jax.ShapeDtypeStruct((bsz, 1, total), jnp.float32),
        grid=grid,
        in_specs=in_specs,
        out_specs=out_specs,
        scratch_shapes=[pltpu.VMEM((num_steps * block_b, dim), jnp.float32)],
        compiler_params=pltpu.CompilerParams(
            dimension_semantics=("parallel",),
            vmem_limit_bytes=vmem_limit),
        cost_estimate=pl.CostEstimate(flops=flops,
                                      transcendentals=transcendentals,
                                      bytes_accessed=bytes_accessed),
    )(q_word_h, mask3, w_step, b_step, w_hw, b_hw, w_rel, b_rel)

    packed = packed[:, 0, :]
    watt_all = packed[:, :num_steps * seq].reshape(bsz, num_steps, seq)
    ctx_all = packed[:, num_steps * seq:num_steps * (seq + dim)
                     ].reshape(bsz, num_steps, dim)
    rel_all = packed[:, num_steps * (seq + dim):].reshape(bsz, num_steps, num_rel)
    return watt_all, ctx_all, rel_all


# ----------------------------------------------------------------------------
# Sparse entity propagation over triples (plain JAX glue: scatter-add).
# ----------------------------------------------------------------------------
def propagate_entities(last_e, rel_dist, triples, num_ents):
    def one(le_b, rd_b, tr_b):
        sub, rel, obj = tr_b[:, 0], tr_b[:, 1], tr_b[:, 2]
        obj_p = le_b[sub] * rd_b[rel]
        return jnp.zeros((num_ents,), jnp.float32).at[obj].add(obj_p)

    new_e = jax.vmap(one)(last_e, rel_dist, triples)
    m = (new_e > 1.0).astype(jnp.float32)
    z = m * new_e + (1.0 - m)
    return new_e / z


# ----------------------------------------------------------------------------
# Full forward (inference path of GFC.forward).
# ----------------------------------------------------------------------------
def gfc_forward(heads, q_word_h, attention_mask, triples, params, num_steps):
    bsz, seq, dim = q_word_h.shape
    num_ents = heads.shape[1]

    mask3 = attention_mask.astype(jnp.float32).reshape(bsz, 1, seq)
    w_step = jnp.stack(params["w_step"], axis=0)      # (T, dim, dim)
    b_step = jnp.stack(params["b_step"], axis=0)      # (T, 1, dim)

    watt_all, ctx_all, rel_all = gfc_fused_steps(
        q_word_h, mask3, w_step, b_step,
        params["w_hw"], params["b_hw"], params["w_rel"], params["b_rel"])

    # Sparse per-step entity propagation (outside the kernel).
    last_e = heads
    ent_probs = []
    for t in range(num_steps):
        last_e = propagate_entities(last_e, rel_all[:, t, :], triples, num_ents)
        ent_probs.append(last_e)
    hop_res = jnp.stack(ent_probs, axis=1)             # (bsz, T, num_ents)

    # Hop attention + weighted sum (tiny -> plain JAX).
    hop_logit = jnp.einsum('btd,od->bto', ctx_all, params["w_hop"]) + params["b_hop"]
    hop_attn = jax.nn.softmax(hop_logit[:, :, 0], axis=-1)   # (bsz, T)
    e_score = jnp.sum(hop_res * hop_attn[:, :, None], axis=1)

    word_attns = [watt_all[:, t:t + 1, :] for t in range(num_steps)]
    rel_probs = [rel_all[:, t, :] for t in range(num_steps)]

    return {
        "e_score": e_score,
        "word_attns": word_attns,
        "rel_probs": rel_probs,
        "ent_probs": ent_probs,
        "hop_attn": hop_attn,
    }


# ----------------------------------------------------------------------------
# Deterministic parameter init + example run.
# ----------------------------------------------------------------------------
def init_params(key, dim, num_rel, num_steps):
    ks = jax.random.split(key, 2 * num_steps + 6)
    params = {
        "w_step": [0.05 * jax.random.normal(ks[2 * t], (dim, dim), jnp.float32)
                   for t in range(num_steps)],
        "b_step": [0.01 * jax.random.normal(ks[2 * t + 1], (1, dim), jnp.float32)
                   for t in range(num_steps)],
        "w_hw": 0.05 * jax.random.normal(ks[2 * num_steps + 0], (dim, dim), jnp.float32),
        "b_hw": 0.01 * jax.random.normal(ks[2 * num_steps + 1], (1, dim), jnp.float32),
        "w_rel": 0.05 * jax.random.normal(ks[2 * num_steps + 2], (dim, num_rel), jnp.float32),
        "b_rel": 0.01 * jax.random.normal(ks[2 * num_steps + 3], (1, num_rel), jnp.float32),
        "w_hop": 0.05 * jax.random.normal(ks[2 * num_steps + 4], (1, dim), jnp.float32),
        "b_hop": 0.01 * jax.random.normal(ks[2 * num_steps + 5], (1, 1), jnp.float32),
    }
    return params


if __name__ == "__main__":
    bsz, seq, dim = 2, 8, 32
    num_rel, num_ents, num_steps, n_tri = 16, 128, 3, 20

    key = jax.random.PRNGKey(0)
    k_q, k_tri, k_head, k_par = jax.random.split(key, 4)

    # Synthetic "BERT last_hidden_state" and attention mask.
    q_word_h = jax.random.normal(k_q, (bsz, seq, dim), jnp.float32)
    attention_mask = jnp.ones((bsz, seq), jnp.float32).at[1, 6:].set(0.0)

    # Per-batch triples (subject, relation, object) and one-hot head entities.
    subs = jax.random.randint(jax.random.fold_in(k_tri, 0), (bsz, n_tri, 1), 0, num_ents)
    rels = jax.random.randint(jax.random.fold_in(k_tri, 1), (bsz, n_tri, 1), 0, num_rel)
    objs = jax.random.randint(jax.random.fold_in(k_tri, 2), (bsz, n_tri, 1), 0, num_ents)
    triples = jnp.concatenate([subs, rels, objs], axis=-1).astype(jnp.int32)

    start_ents = jax.random.randint(k_head, (bsz,), 0, num_ents)
    heads = jnp.zeros((bsz, num_ents), jnp.float32).at[jnp.arange(bsz), start_ents].set(1.0)

    params = init_params(k_par, dim, num_rel, num_steps)

    fwd = jax.jit(gfc_forward, static_argnames=("num_steps",))
    out = fwd(heads, q_word_h, attention_mask, triples, params, num_steps=num_steps)
    jax.block_until_ready(out["e_score"])
    jax.block_until_ready(out["hop_attn"])

    assert out["e_score"].shape == (bsz, num_ents)
    assert out["hop_attn"].shape == (bsz, num_steps)
    assert len(out["rel_probs"]) == num_steps and out["rel_probs"][0].shape == (bsz, num_rel)
    assert len(out["word_attns"]) == num_steps and out["word_attns"][0].shape == (bsz, 1, seq)
    print("KERNEL_OK")
</pallas_src>

<mosaic_0001>
module attributes {stable_mosaic.version = 11 : i64} {
  func.func @_gfc_fused_kernel(%arg0: i32, %arg1: memref<2x8x32xf32, #tpu.memory_space<vmem>>, %arg2: memref<2x1x8xf32, #tpu.memory_space<vmem>>, %arg3: memref<3x32x32xf32, #tpu.memory_space<vmem>>, %arg4: memref<3x1x32xf32, #tpu.memory_space<vmem>>, %arg5: memref<32x32xf32, #tpu.memory_space<vmem>>, %arg6: memref<1x32xf32, #tpu.memory_space<vmem>>, %arg7: memref<32x16xf32, #tpu.memory_space<vmem>>, %arg8: memref<1x16xf32, #tpu.memory_space<vmem>>, %arg9: memref<2x1x168xf32, #tpu.memory_space<vmem>>, %arg10: memref<6x32xf32, #tpu.memory_space<vmem>>) attributes {dimension_semantics = [#tpu.dimension_semantics<parallel>], iteration_bounds = array<i64: 1>, scalar_prefetch = 0 : i64, scratch_operands = 1 : i64, tpu.core_type = #tpu.core_type<tc>, window_params = [{transform_indices = @transform_0, window_bounds = array<i64: 2, 8, 32>}, {transform_indices = @transform_1, window_bounds = array<i64: 2, 1, 8>}, {pipeline_mode = #tpu.pipeline_mode<synchronous>, transform_indices = @transform_2, window_bounds = array<i64: 3, 32, 32>}, {pipeline_mode = #tpu.pipeline_mode<synchronous>, transform_indices = @transform_3, window_bounds = array<i64: 3, 1, 32>}, {pipeline_mode = #tpu.pipeline_mode<synchronous>, transform_indices = @transform_4, window_bounds = array<i64: 32, 32>}, {pipeline_mode = #tpu.pipeline_mode<synchronous>, transform_indices = @transform_5, window_bounds = array<i64: 1, 32>}, {pipeline_mode = #tpu.pipeline_mode<synchronous>, transform_indices = @transform_6, window_bounds = array<i64: 32, 16>}, {pipeline_mode = #tpu.pipeline_mode<synchronous>, transform_indices = @transform_7, window_bounds = array<i64: 1, 16>}, {transform_indices = @transform_8, window_bounds = array<i64: 2, 1, 168>}]} {
    %c0 = arith.constant 0 : index
    %c0_0 = arith.constant 0 : index
    %c0_1 = arith.constant 0 : index
    %0 = vector.load %arg1[%c0, %c0_0, %c0_1] : memref<2x8x32xf32, #tpu.memory_space<vmem>>, vector<2x8x32xf32>
    %c0_2 = arith.constant 0 : index
    %c0_3 = arith.constant 0 : index
    %c0_4 = arith.constant 0 : index
    %1 = vector.load %arg2[%c0_2, %c0_3, %c0_4] : memref<2x1x8xf32, #tpu.memory_space<vmem>>, vector<2x1x8xf32>
    %2 = vector.shape_cast %1 : vector<2x1x8xf32> to vector<2x8xf32>
    %c0_5 = arith.constant 0 : index
    %c0_6 = arith.constant 0 : index
    %3 = vector.load %arg5[%c0_5, %c0_6] : memref<32x32xf32, #tpu.memory_space<vmem>>, vector<32x32xf32>
    %c0_7 = arith.constant 0 : index
    %c0_8 = arith.constant 0 : index
    %4 = vector.load %arg6[%c0_7, %c0_8] : memref<1x32xf32, #tpu.memory_space<vmem>>, vector<1x32xf32>
    %c0_9 = arith.constant 0 : index
    %c0_10 = arith.constant 0 : index
    %5 = vector.load %arg7[%c0_9, %c0_10] : memref<32x16xf32, #tpu.memory_space<vmem>>, vector<32x16xf32>
    %c0_11 = arith.constant 0 : index
    %c0_12 = arith.constant 0 : index
    %6 = vector.load %arg8[%c0_11, %c0_12] : memref<1x16xf32, #tpu.memory_space<vmem>>, vector<1x16xf32>
    %7 = vector.shape_cast %0 : vector<2x8x32xf32> to vector<16x32xf32>
    %c0_13 = arith.constant 0 : index
    %c0_14 = arith.constant 0 : index
    %c0_15 = arith.constant 0 : index
    %8 = vector.load %arg3[%c0_13, %c0_14, %c0_15] : memref<3x32x32xf32, #tpu.memory_space<vmem>>, vector<1x32x32xf32>
    %9 = vector.shape_cast %8 : vector<1x32x32xf32> to vector<32x32xf32>
    %cst = arith.constant dense<0.000000e+00> : vector<16x32xf32>
    %10 = tpu.matmul %7, %9, %cst {dimension_numbers = #tpu.dot_dimension_numbers<[1], [0], [0], [1], [0, 0, 1, 1], [], []>} : vector<16x32xf32>, vector<32x32xf32>, vector<16x32xf32> -> vector<16x32xf32>
    %c0_16 = arith.constant 0 : index
    %c0_17 = arith.constant 0 : index
    %c0_18 = arith.constant 0 : index
    %11 = vector.load %arg4[%c0_16, %c0_17, %c0_18] : memref<3x1x32xf32, #tpu.memory_space<vmem>>, vector<1x1x32xf32>
    %12 = vector.shape_cast %11 : vector<1x1x32xf32> to vector<1x32xf32>
    %13 = vector.broadcast %12 : vector<1x32xf32> to vector<16x32xf32>
    %14 = arith.addf %10, %13 : vector<16x32xf32>
    %15 = vector.shape_cast %14 : vector<16x32xf32> to vector<2x8x32xf32>
    "tpu.trace_start"() <{level = 10 : i32, message = "bid,bjd->bij"}> : () -> ()
    %cst_19 = arith.constant dense<0.000000e+00> : vector<2x8x8xf32>
    %16 = tpu.matmul %0, %15, %cst_19 {dimension_numbers = #tpu.dot_dimension_numbers<[2], [2], [1], [1], [0, 0, 0, 1, 1, 1], [0], [0]>} : vector<2x8x32xf32>, vector<2x8x32xf32>, vector<2x8x8xf32> -> vector<2x8x8xf32>
    "tpu.trace_stop"() : () -> ()
    %cst_20 = arith.constant dense<0xFF800000> : vector<2x8xf32>
    %17 = vector.multi_reduction <maximumf>, %16, %cst_20 [2] : vector<2x8x8xf32> to vector<2x8xf32>
    %18 = vector.shape_cast %17 : vector<2x8xf32> to vector<2x8x1xf32>
    %19 = vector.broadcast %18 : vector<2x8x1xf32> to vector<2x8x8xf32>
    %20 = arith.subf %16, %19 : vector<2x8x8xf32>
    %21 = math.exp %20 : vector<2x8x8xf32>
    %cst_21 = arith.constant dense<0.000000e+00> : vector<2x8xf32>
    %22 = vector.multi_reduction <add>, %21, %cst_21 [2] : vector<2x8x8xf32> to vector<2x8xf32>
    %23 = vector.shape_cast %22 : vector<2x8xf32> to vector<2x8x1xf32>
    %24 = vector.broadcast %23 : vector<2x8x1xf32> to vector<2x8x8xf32>
    %25 = arith.divf %21, %24 : vector<2x8x8xf32>
    %26 = vector.broadcast %1 : vector<2x1x8xf32> to vector<2x8x8xf32>
    %27 = arith.mulf %25, %26 : vector<2x8x8xf32>
    %cst_22 = arith.constant dense<0.000000e+00> : vector<2x8xf32>
    %28 = vector.multi_reduction <add>, %27, %cst_22 [2] : vector<2x8x8xf32> to vector<2x8xf32>
    %29 = vector.shape_cast %28 : vector<2x8xf32> to vector<2x8x1xf32>
    %cst_23 = arith.constant 9.99999997E-7 : f32
    %30 = vector.broadcast %cst_23 : f32 to vector<2x8x1xf32>
    %31 = arith.addf %29, %30 : vector<2x8x1xf32>
    %32 = vector.broadcast %31 : vector<2x8x1xf32> to vector<2x8x8xf32>
    %33 = arith.divf %27, %32 : vector<2x8x8xf32>
    "tpu.trace_start"() <{level = 10 : i32, message = "bij,bjd->bid"}> : () -> ()
    %cst_24 = arith.constant dense<0.000000e+00> : vector<2x8x32xf32>
    %34 = tpu.matmul %33, %0, %cst_24 {dimension_numbers = #tpu.dot_dimension_numbers<[2], [1], [1], [2], [0, 0, 0, 1, 1, 2], [0], [0]>} : vector<2x8x8xf32>, vector<2x8x32xf32>, vector<2x8x32xf32> -> vector<2x8x32xf32>
    "tpu.trace_stop"() : () -> ()
    %35 = arith.addf %0, %34 : vector<2x8x32xf32>
    %cst_25 = arith.constant dense<0.000000e+00> : vector<2x8xf32>
    %36 = vector.multi_reduction <add>, %33, %cst_25 [1] : vector<2x8x8xf32> to vector<2x8xf32>
    %cst_26 = arith.constant dense<0xFF800000> : vector<2xf32>
    %37 = vector.multi_reduction <maximumf>, %36, %cst_26 [1] : vector<2x8xf32> to vector<2xf32>
    %38 = vector.shape_cast %37 : vector<2xf32> to vector<2x1xf32>
    %39 = vector.broadcast %38 : vector<2x1xf32> to vector<2x8xf32>
    %40 = arith.subf %36, %39 : vector<2x8xf32>
    %41 = math.exp %40 : vector<2x8xf32>
    %cst_27 = arith.constant dense<0.000000e+00> : vector<2xf32>
    %42 = vector.multi_reduction <add>, %41, %cst_27 [1] : vector<2x8xf32> to vector<2xf32>
    %43 = vector.shape_cast %42 : vector<2xf32> to vector<2x1xf32>
    %44 = vector.broadcast %43 : vector<2x1xf32> to vector<2x8xf32>
    %45 = arith.divf %41, %44 : vector<2x8xf32>
    %46 = arith.mulf %45, %2 : vector<2x8xf32>
    %cst_28 = arith.constant dense<0.000000e+00> : vector<2xf32>
    %47 = vector.multi_reduction <add>, %46, %cst_28 [1] : vector<2x8xf32> to vector<2xf32>
    %48 = vector.shape_cast %47 : vector<2xf32> to vector<2x1xf32>
    %cst_29 = arith.constant 9.99999997E-7 : f32
    %49 = vector.broadcast %cst_29 : f32 to vector<2x1xf32>
    %50 = arith.addf %48, %49 : vector<2x1xf32>
    %51 = vector.broadcast %50 : vector<2x1xf32> to vector<2x8xf32>
    %52 = arith.divf %46, %51 : vector<2x8xf32>
    %53 = vector.shape_cast %52 : vector<2x8xf32> to vector<2x8x1xf32>
    %54 = vector.broadcast %53 : vector<2x8x1xf32> to vector<2x8x32xf32>
    %55 = arith.mulf %54, %35 : vector<2x8x32xf32>
    %cst_30 = arith.constant dense<0.000000e+00> : vector<2x32xf32>
    %56 = vector.multi_reduction <add>, %55, %cst_30 [1] : vector<2x8x32xf32> to vector<2x32xf32>
    %c0_31 = arith.constant 0 : index
    %c0_32 = arith.constant 0 : index
    %c0_33 = arith.constant 0 : index
    %57 = vector.load %arg9[%c0_31, %c0_32, %c0_33] : memref<2x1x168xf32, #tpu.memory_space<vmem>>, vector<2x1x8xf32>
    %58 = vector.shape_cast %57 : vector<2x1x8xf32> to vector<2x8xf32>
    %59 = vector.shape_cast %52 : vector<2x8xf32> to vector<2x1x8xf32>
    tpu.vector_store %arg9[%c0_31, %c0_32, %c0_33], %59 {strides = array<i32>} : memref<2x1x168xf32, #tpu.memory_space<vmem>>, vector<2x1x8xf32>,
    %c0_34 = arith.constant 0 : index
    %c0_35 = arith.constant 0 : index
    %c24 = arith.constant 24 : index
    %60 = vector.load %arg9[%c0_34, %c0_35, %c24] : memref<2x1x168xf32, #tpu.memory_space<vmem>>, vector<2x1x32xf32>
    %61 = vector.shape_cast %60 : vector<2x1x32xf32> to vector<2x32xf32>
    %62 = vector.shape_cast %56 : vector<2x32xf32> to vector<2x1x32xf32>
    tpu.vector_store %arg9[%c0_34, %c0_35, %c24], %62 {strides = array<i32>} : memref<2x1x168xf32, #tpu.memory_space<vmem>>, vector<2x1x32xf32>,
    %c0_36 = arith.constant 0 : index
    %c0_37 = arith.constant 0 : index
    %63 = vector.load %arg10[%c0_36, %c0_37] : memref<6x32xf32, #tpu.memory_space<vmem>>, vector<2x32xf32>
    tpu.vector_store %arg10[%c0_36, %c0_37], %56 {strides = array<i32>} : memref<6x32xf32, #tpu.memory_space<vmem>>, vector<2x32xf32>,
    %64 = vector.shape_cast %35 : vector<2x8x32xf32> to vector<16x32xf32>
    %c1 = arith.constant 1 : index
    %c0_38 = arith.constant 0 : index
    %c0_39 = arith.constant 0 : index
    %65 = vector.load %arg3[%c1, %c0_38, %c0_39] : memref<3x32x32xf32, #tpu.memory_space<vmem>>, vector<1x32x32xf32>
    %66 = vector.shape_cast %65 : vector<1x32x32xf32> to vector<32x32xf32>
    %cst_40 = arith.constant dense<0.000000e+00> : vector<16x32xf32>
    %67 = tpu.matmul %64, %66, %cst_40 {dimension_numbers = #tpu.dot_dimension_numbers<[1], [0], [0], [1], [0, 0, 1, 1], [], []>} : vector<16x32xf32>, vector<32x32xf32>, vector<16x32xf32> -> vector<16x32xf32>
    %c1_41 = arith.constant 1 : index
    %c0_42 = arith.constant 0 : index
    %c0_43 = arith.constant 0 : index
    %68 = vector.load %arg4[%c1_41, %c0_42, %c0_43] : memref<3x1x32xf32, #tpu.memory_space<vmem>>, vector<1x1x32xf32>
    %69 = vector.shape_cast %68 : vector<1x1x32xf32> to vector<1x32xf32>
    %70 = vector.broadcast %69 : vector<1x32xf32> to vector<16x32xf32>
    %71 = arith.addf %67, %70 : vector<16x32xf32>
    %72 = vector.shape_cast %71 : vector<16x32xf32> to vector<2x8x32xf32>
    "tpu.trace_start"() <{level = 10 : i32, message = "bid,bjd->bij"}> : () -> ()
    %cst_44 = arith.constant dense<0.000000e+00> : vector<2x8x8xf32>
    %73 = tpu.matmul %0, %72, %cst_44 {dimension_numbers = #tpu.dot_dimension_numbers<[2], [2], [1], [1], [0, 0, 0, 1, 1, 1], [0], [0]>} : vector<2x8x32xf32>, vector<2x8x32xf32>, vector<2x8x8xf32> -> vector<2x8x8xf32>
    "tpu.trace_stop"() : () -> ()
    %cst_45 = arith.constant dense<0xFF800000> : vector<2x8xf32>
    %74 = vector.multi_reduction <maximumf>, %73, %cst_45 [2] : vector<2x8x8xf32> to vector<2x8xf32>
    %75 = vector.shape_cast %74 : vector<2x8xf32> to vector<2x8x1xf32>
    %76 = vector.broadcast %75 : vector<2x8x1xf32> to vector<2x8x8xf32>
    %77 = arith.subf %73, %76 : vector<2x8x8xf32>
    %78 = math.exp %77 : vector<2x8x8xf32>
    %cst_46 = arith.constant dense<0.000000e+00> : vector<2x8xf32>
    %79 = vector.multi_reduction <add>, %78, %cst_46 [2] : vector<2x8x8xf32> to vector<2x8xf32>
    %80 = vector.shape_cast %79 : vector<2x8xf32> to vector<2x8x1xf32>
    %81 = vector.broadcast %80 : vector<2x8x1xf32> to vector<2x8x8xf32>
    %82 = arith.divf %78, %81 : vector<2x8x8xf32>
    %83 = vector.broadcast %1 : vector<2x1x8xf32> to vector<2x8x8xf32>
    %84 = arith.mulf %82, %83 : vector<2x8x8xf32>
    %cst_47 = arith.constant dense<0.000000e+00> : vector<2x8xf32>
    %85 = vector.multi_reduction <add>, %84, %cst_47 [2] : vector<2x8x8xf32> to vector<2x8xf32>
    %86 = vector.shape_cast %85 : vector<2x8xf32> to vector<2x8x1xf32>
    %cst_48 = arith.constant 9.99999997E-7 : f32
    %87 = vector.broadcast %cst_48 : f32 to vector<2x8x1xf32>
    %88 = arith.addf %86, %87 : vector<2x8x1xf32>
    %89 = vector.broadcast %88 : vector<2x8x1xf32> to vector<2x8x8xf32>
    %90 = arith.divf %84, %89 : vector<2x8x8xf32>
    "tpu.trace_start"() <{level = 10 : i32, message = "bij,bjd->bid"}> : () -> ()
    %cst_49 = arith.constant dense<0.000000e+00> : vector<2x8x32xf32>
    %91 = tpu.matmul %90, %35, %cst_49 {dimension_numbers = #tpu.dot_dimension_numbers<[2], [1], [1], [2], [0, 0, 0, 1, 1, 2], [0], [0]>} : vector<2x8x8xf32>, vector<2x8x32xf32>, vector<2x8x32xf32> -> vector<2x8x32xf32>
    "tpu.trace_stop"() : () -> ()
    %92 = vector.shape_cast %34 : vector<2x8x32xf32> to vector<16x32xf32>
    %cst_50 = arith.constant dense<0.000000e+00> : vector<16x32xf32>
    %93 = tpu.matmul %92, %3, %cst_50 {dimension_numbers = #tpu.dot_dimension_numbers<[1], [0], [0], [1], [0, 0, 1, 1], [], []>} : vector<16x32xf32>, vector<32x32xf32>, vector<16x32xf32> -> vector<16x32xf32>
    %94 = vector.broadcast %4 : vector<1x32xf32> to vector<16x32xf32>
    %95 = arith.addf %93, %94 : vector<16x32xf32>
    %96 = arith.negf %95 : vector<16x32xf32>
    %97 = math.exp %96 : vector<16x32xf32>
    %cst_51 = arith.constant 1.000000e+00 : f32
    %98 = vector.broadcast %cst_51 : f32 to vector<16x32xf32>
    %99 = arith.addf %98, %97 : vector<16x32xf32>
    %100 = arith.divf %98, %99 : vector<16x32xf32>
    %101 = arith.mulf %100, %92 : vector<16x32xf32>
    %102 = vector.shape_cast %101 : vector<16x32xf32> to vector<2x8x32xf32>
    %103 = arith.addf %0, %91 : vector<2x8x32xf32>
    %104 = arith.addf %103, %102 : vector<2x8x32xf32>
    %105 = arith.addf %91, %102 : vector<2x8x32xf32>
    %cst_52 = arith.constant dense<0.000000e+00> : vector<2x8xf32>
    %106 = vector.multi_reduction <add>, %90, %cst_52 [1] : vector<2x8x8xf32> to vector<2x8xf32>
    %cst_53 = arith.constant dense<0xFF800000> : vector<2xf32>
    %107 = vector.multi_reduction <maximumf>, %106, %cst_53 [1] : vector<2x8xf32> to vector<2xf32>
    %108 = vector.shape_cast %107 : vector<2xf32> to vector<2x1xf32>
    %109 = vector.broadcast %108 : vector<2x1xf32> to vector<2x8xf32>
    %110 = arith.subf %106, %109 : vector<2x8xf32>
    %111 = math.exp %110 : vector<2x8xf32>
    %cst_54 = arith.constant dense<0.000000e+00> : vector<2xf32>
    %112 = vector.multi_reduction <add>, %111, %cst_54 [1] : vector<2x8xf32> to vector<2xf32>
    %113 = vector.shape_cast %112 : vector<2xf32> to vector<2x1xf32>
    %114 = vector.broadcast %113 : vector<2x1xf32> to vector<2x8xf32>
    %115 = arith.divf %111, %114 : vector<2x8xf32>
    %116 = arith.mulf %115, %2 : vector<2x8xf32>
    %cst_55 = arith.constant dense<0.000000e+00> : vector<2xf32>
    %117 = vector.multi_reduction <add>, %116, %cst_55 [1] : vector<2x8xf32> to vector<2xf32>
    %118 = vector.shape_cast %117 : vector<2xf32> to vector<2x1xf32>
    %cst_56 = arith.constant 9.99999997E-7 : f32
    %119 = vector.broadcast %cst_56 : f32 to vector<2x1xf32>
    %120 = arith.addf %118, %119 : vector<2x1xf32>
    %121 = vector.broadcast %120 : vector<2x1xf32> to vector<2x8xf32>
    %122 = arith.divf %116, %121 : vector<2x8xf32>
    %123 = vector.shape_cast %122 : vector<2x8xf32> to vector<2x8x1xf32>
    %124 = vector.broadcast %123 : vector<2x8x1xf32> to vector<2x8x32xf32>
    %125 = arith.mulf %124, %104 : vector<2x8x32xf32>
    %cst_57 = arith.constant dense<0.000000e+00> : vector<2x32xf32>
    %126 = vector.multi_reduction <add>, %125, %cst_57 [1] : vector<2x8x32xf32> to vector<2x32xf32>
    %c0_58 = arith.constant 0 : index
    %c0_59 = arith.constant 0 : index
    %c8 = arith.constant 8 : index
    %127 = vector.load %arg9[%c0_58, %c0_59, %c8] : memref<2x1x168xf32, #tpu.memory_space<vmem>>, vector<2x1x8xf32>
    %128 = vector.shape_cast %127 : vector<2x1x8xf32> to vector<2x8xf32>
    %129 = vector.shape_cast %122 : vector<2x8xf32> to vector<2x1x8xf32>
    tpu.vector_store %arg9[%c0_58, %c0_59, %c8], %129 {strides = array<i32>} : memref<2x1x168xf32, #tpu.memory_space<vmem>>, vector<2x1x8xf32>,
    %c0_60 = arith.constant 0 : index
    %c0_61 = arith.constant 0 : index
    %c56 = arith.constant 56 : index
    %130 = vector.load %arg9[%c0_60, %c0_61, %c56] : memref<2x1x168xf32, #tpu.memory_space<vmem>>, vector<2x1x32xf32>
    %131 = vector.shape_cast %130 : vector<2x1x32xf32> to vector<2x32xf32>
    %132 = vector.shape_cast %126 : vector<2x32xf32> to vector<2x1x32xf32>
    tpu.vector_store %arg9[%c0_60, %c0_61, %c56], %132 {strides = array<i32>} : memref<2x1x168xf32, #tpu.memory_space<vmem>>, vector<2x1x32xf32>,
    %c2 = arith.constant 2 : index
    %c0_62 = arith.constant 0 : index
    %133 = vector.load %arg10[%c2, %c0_62] : memref<6x32xf32, #tpu.memory_space<vmem>>, vector<2x32xf32>
    tpu.vector_store %arg10[%c2, %c0_62], %126 {strides = array<i32>} : memref<6x32xf32, #tpu.memory_space<vmem>>, vector<2x32xf32>,
    %134 = vector.shape_cast %104 : vector<2x8x32xf32> to vector<16x32xf32>
    %c2_63 = arith.constant 2 : index
    %c0_64 = arith.constant 0 : index
    %c0_65 = arith.constant 0 : index
    %135 = vector.load %arg3[%c2_63, %c0_64, %c0_65] : memref<3x32x32xf32, #tpu.memory_space<vmem>>, vector<1x32x32xf32>
    %136 = vector.shape_cast %135 : vector<1x32x32xf32> to vector<32x32xf32>
    %cst_66 = arith.constant dense<0.000000e+00> : vector<16x32xf32>
    %137 = tpu.matmul %134, %136, %cst_66 {dimension_numbers = #tpu.dot_dimension_numbers<[1], [0], [0], [1], [0, 0, 1, 1], [], []>} : vector<16x32xf32>, vector<32x32xf32>, vector<16x32xf32> -> vector<16x32xf32>
    %c2_67 = arith.constant 2 : index
    %c0_68 = arith.constant 0 : index
    %c0_69 = arith.constant 0 : index
    %138 = vector.load %arg4[%c2_67, %c0_68, %c0_69] : memref<3x1x32xf32, #tpu.memory_space<vmem>>, vector<1x1x32xf32>
    %139 = vector.shape_cast %138 : vector<1x1x32xf32> to vector<1x32xf32>
    %140 = vector.broadcast %139 : vector<1x32xf32> to vector<16x32xf32>
    %141 = arith.addf %137, %140 : vector<16x32xf32>
    %142 = vector.shape_cast %141 : vector<16x32xf32> to vector<2x8x32xf32>
    "tpu.trace_start"() <{level = 10 : i32, message = "bid,bjd->bij"}> : () -> ()
    %cst_70 = arith.constant dense<0.000000e+00> : vector<2x8x8xf32>
    %143 = tpu.matmul %0, %142, %cst_70 {dimension_numbers = #tpu.dot_dimension_numbers<[2], [2], [1], [1], [0, 0, 0, 1, 1, 1], [0], [0]>} : vector<2x8x32xf32>, vector<2x8x32xf32>, vector<2x8x8xf32> -> vector<2x8x8xf32>
    "tpu.trace_stop"() : () -> ()
    %cst_71 = arith.constant dense<0xFF800000> : vector<2x8xf32>
    %144 = vector.multi_reduction <maximumf>, %143, %cst_71 [2] : vector<2x8x8xf32> to vector<2x8xf32>
    %145 = vector.shape_cast %144 : vector<2x8xf32> to vector<2x8x1xf32>
    %146 = vector.broadcast %145 : vector<2x8x1xf32> to vector<2x8x8xf32>
    %147 = arith.subf %143, %146 : vector<2x8x8xf32>
    %148 = math.exp %147 : vector<2x8x8xf32>
    %cst_72 = arith.constant dense<0.000000e+00> : vector<2x8xf32>
    %149 = vector.multi_reduction <add>, %148, %cst_72 [2] : vector<2x8x8xf32> to vector<2x8xf32>
    %150 = vector.shape_cast %149 : vector<2x8xf32> to vector<2x8x1xf32>
    %151 = vector.broadcast %150 : vector<2x8x1xf32> to vector<2x8x8xf32>
    %152 = arith.divf %148, %151 : vector<2x8x8xf32>
    %153 = vector.broadcast %1 : vector<2x1x8xf32> to vector<2x8x8xf32>
    %154 = arith.mulf %152, %153 : vector<2x8x8xf32>
    %cst_73 = arith.constant dense<0.000000e+00> : vector<2x8xf32>
    %155 = vector.multi_reduction <add>, %154, %cst_73 [2] : vector<2x8x8xf32> to vector<2x8xf32>
    %156 = vector.shape_cast %155 : vector<2x8xf32> to vector<2x8x1xf32>
    %cst_74 = arith.constant 9.99999997E-7 : f32
    %157 = vector.broadcast %cst_74 : f32 to vector<2x8x1xf32>
    %158 = arith.addf %156, %157 : vector<2x8x1xf32>
    %159 = vector.broadcast %158 : vector<2x8x1xf32> to vector<2x8x8xf32>
    %160 = arith.divf %154, %159 : vector<2x8x8xf32>
    "tpu.trace_start"() <{level = 10 : i32, message = "bij,bjd->bid"}> : () -> ()
    %cst_75 = arith.constant dense<0.000000e+00> : vector<2x8x32xf32>
    %161 = tpu.matmul %160, %104, %cst_75 {dimension_numbers = #tpu.dot_dimension_numbers<[2], [1], [1], [2], [0, 0, 0, 1, 1, 2], [0], [0]>} : vector<2x8x8xf32>, vector<2x8x32xf32>, vector<2x8x32xf32> -> vector<2x8x32xf32>
    "tpu.trace_stop"() : () -> ()
    %162 = vector.shape_cast %105 : vector<2x8x32xf32> to vector<16x32xf32>
    %cst_76 = arith.constant dense<0.000000e+00> : vector<16x32xf32>
    %163 = tpu.matmul %162, %3, %cst_76 {dimension_numbers = #tpu.dot_dimension_numbers<[1], [0], [0], [1], [0, 0, 1, 1], [], []>} : vector<16x32xf32>, vector<32x32xf32>, vector<16x32xf32> -> vector<16x32xf32>
    %164 = vector.broadcast %4 : vector<1x32xf32> to vector<16x32xf32>
    %165 = arith.addf %163, %164 : vector<16x32xf32>
    %166 = arith.negf %165 : vector<16x32xf32>
    %167 = math.exp %166 : vector<16x32xf32>
    %cst_77 = arith.constant 1.000000e+00 : f32
    %168 = vector.broadcast %cst_77 : f32 to vector<16x32xf32>
    %169 = arith.addf %168, %167 : vector<16x32xf32>
    %170 = arith.divf %168, %169 : vector<16x32xf32>
    %171 = arith.mulf %170, %162 : vector<16x32xf32>
    %172 = vector.shape_cast %171 : vector<16x32xf32> to vector<2x8x32xf32>
    %173 = arith.addf %0, %161 : vector<2x8x32xf32>
    %174 = arith.addf %173, %172 : vector<2x8x32xf32>
    %cst_78 = arith.constant dense<0.000000e+00> : vector<2x8xf32>
    %175 = vector.multi_reduction <add>, %160, %cst_78 [1] : vector<2x8x8xf32> to vector<2x8xf32>
    %cst_79 = arith.constant dense<0xFF800000> : vector<2xf32>
    %176 = vector.multi_reduction <maximumf>, %175, %cst_79 [1] : vector<2x8xf32> to vector<2xf32>
    %177 = vector.shape_cast %176 : vector<2xf32> to vector<2x1xf32>
    %178 = vector.broadcast %177 : vector<2x1xf32> to vector<2x8xf32>
    %179 = arith.subf %175, %178 : vector<2x8xf32>
    %180 = math.exp %179 : vector<2x8xf32>
    %cst_80 = arith.constant dense<0.000000e+00> : vector<2xf32>
    %181 = vector.multi_reduction <add>, %180, %cst_80 [1] : vector<2x8xf32> to vector<2xf32>
    %182 = vector.shape_cast %181 : vector<2xf32> to vector<2x1xf32>
    %183 = vector.broadcast %182 : vector<2x1xf32> to vector<2x8xf32>
    %184 = arith.divf %180, %183 : vector<2x8xf32>
    %185 = arith.mulf %184, %2 : vector<2x8xf32>
    %cst_81 = arith.constant dense<0.000000e+00> : vector<2xf32>
    %186 = vector.multi_reduction <add>, %185, %cst_81 [1] : vector<2x8xf32> to vector<2xf32>
    %187 = vector.shape_cast %186 : vector<2xf32> to vector<2x1xf32>
    %cst_82 = arith.constant 9.99999997E-7 : f32
    %188 = vector.broadcast %cst_82 : f32 to vector<2x1xf32>
    %189 = arith.addf %187, %188 : vector<2x1xf32>
    %190 = vector.broadcast %189 : vector<2x1xf32> to vector<2x8xf32>
    %191 = arith.divf %185, %190 : vector<2x8xf32>
    %192 = vector.shape_cast %191 : vector<2x8xf32> to vector<2x8x1xf32>
    %193 = vector.broadcast %192 : vector<2x8x1xf32> to vector<2x8x32xf32>
    %194 = arith.mulf %193, %174 : vector<2x8x32xf32>
    %cst_83 = arith.constant dense<0.000000e+00> : vector<2x32xf32>
    %195 = vector.multi_reduction <add>, %194, %cst_83 [1] : vector<2x8x32xf32> to vector<2x32xf32>
    %c0_84 = arith.constant 0 : index
    %c0_85 = arith.constant 0 : index
    %c16 = arith.constant 16 : index
    %196 = vector.load %arg9[%c0_84, %c0_85, %c16] : memref<2x1x168xf32, #tpu.memory_space<vmem>>, vector<2x1x8xf32>
    %197 = vector.shape_cast %196 : vector<2x1x8xf32> to vector<2x8xf32>
    %198 = vector.shape_cast %191 : vector<2x8xf32> to vector<2x1x8xf32>
    tpu.vector_store %arg9[%c0_84, %c0_85, %c16], %198 {strides = array<i32>} : memref<2x1x168xf32, #tpu.memory_space<vmem>>, vector<2x1x8xf32>,
    %c0_86 = arith.constant 0 : index
    %c0_87 = arith.constant 0 : index
    %c88 = arith.constant 88 : index
    %199 = vector.load %arg9[%c0_86, %c0_87, %c88] : memref<2x1x168xf32, #tpu.memory_space<vmem>>, vector<2x1x32xf32>
    %200 = vector.shape_cast %199 : vector<2x1x32xf32> to vector<2x32xf32>
    %201 = vector.shape_cast %195 : vector<2x32xf32> to vector<2x1x32xf32>
    tpu.vector_store %arg9[%c0_86, %c0_87, %c88], %201 {strides = array<i32>} : memref<2x1x168xf32, #tpu.memory_space<vmem>>, vector<2x1x32xf32>,
    %c4 = arith.constant 4 : index
    %c0_88 = arith.constant 0 : index
    %202 = vector.load %arg10[%c4, %c0_88] : memref<6x32xf32, #tpu.memory_space<vmem>>, vector<2x32xf32>
    tpu.vector_store %arg10[%c4, %c0_88], %195 {strides = array<i32>} : memref<6x32xf32, #tpu.memory_space<vmem>>, vector<2x32xf32>,
    %c0_89 = arith.constant 0 : index
    %c0_90 = arith.constant 0 : index
    %203 = vector.load %arg10[%c0_89, %c0_90] : memref<6x32xf32, #tpu.memory_space<vmem>>, vector<6x32xf32>
    %cst_91 = arith.constant dense<0.000000e+00> : vector<6x16xf32>
    %204 = tpu.matmul %203, %5, %cst_91 {dimension_numbers = #tpu.dot_dimension_numbers<[1], [0], [0], [1], [0, 0, 1, 1], [], []>} : vector<6x32xf32>, vector<32x16xf32>, vector<6x16xf32> -> vector<6x16xf32>
    %205 = vector.broadcast %6 : vector<1x16xf32> to vector<6x16xf32>
    %206 = arith.addf %204, %205 : vector<6x16xf32>
    %207 = arith.negf %206 : vector<6x16xf32>
    %208 = math.exp %207 : vector<6x16xf32>
    %cst_92 = arith.constant 1.000000e+00 : f32
    %209 = vector.broadcast %cst_92 : f32 to vector<6x16xf32>
    %210 = arith.addf %209, %208 : vector<6x16xf32>
    %211 = arith.divf %209, %210 : vector<6x16xf32>
    %212 = vector.extract_strided_slice %211 {offsets = [0, 0], sizes = [2, 16], strides = [1, 1]} : vector<6x16xf32> to vector<2x16xf32>
    %c0_93 = arith.constant 0 : index
    %c0_94 = arith.constant 0 : index
    %c120 = arith.constant 120 : index
    %213 = vector.load %arg9[%c0_93, %c0_94, %c120] : memref<2x1x168xf32, #tpu.memory_space<vmem>>, vector<2x1x16xf32>
    %214 = vector.shape_cast %213 : vector<2x1x16xf32> to vector<2x16xf32>
    %215 = vector.shape_cast %212 : vector<2x16xf32> to vector<2x1x16xf32>
    tpu.vector_store %arg9[%c0_93, %c0_94, %c120], %215 {strides = array<i32>} : memref<2x1x168xf32, #tpu.memory_space<vmem>>, vector<2x1x16xf32>,
    %216 = vector.extract_strided_slice %211 {offsets = [2, 0], sizes = [2, 16], strides = [1, 1]} : vector<6x16xf32> to vector<2x16xf32>
    %c0_95 = arith.constant 0 : index
    %c0_96 = arith.constant 0 : index
    %c136 = arith.constant 136 : index
    %217 = vector.load %arg9[%c0_95, %c0_96, %c136] : memref<2x1x168xf32, #tpu.memory_space<vmem>>, vector<2x1x16xf32>
    %218 = vector.shape_cast %217 : vector<2x1x16xf32> to vector<2x16xf32>
    %219 = vector.shape_cast %216 : vector<2x16xf32> to vector<2x1x16xf32>
    tpu.vector_store %arg9[%c0_95, %c0_96, %c136], %219 {strides = array<i32>} : memref<2x1x168xf32, #tpu.memory_space<vmem>>, vector<2x1x16xf32>,
    %220 = vector.extract_strided_slice %211 {offsets = [4, 0], sizes = [2, 16], strides = [1, 1]} : vector<6x16xf32> to vector<2x16xf32>
    %c0_97 = arith.constant 0 : index
    %c0_98 = arith.constant 0 : index
    %c152 = arith.constant 152 : index
    %221 = vector.load %arg9[%c0_97, %c0_98, %c152] : memref<2x1x168xf32, #tpu.memory_space<vmem>>, vector<2x1x16xf32>
    %222 = vector.shape_cast %221 : vector<2x1x16xf32> to vector<2x16xf32>
    %223 = vector.shape_cast %220 : vector<2x16xf32> to vector<2x1x16xf32>
    tpu.vector_store %arg9[%c0_97, %c0_98, %c152], %223 {strides = array<i32>} : memref<2x1x168xf32, #tpu.memory_space<vmem>>, vector<2x1x16xf32>,
    return
  }
  func.func @transform_0(%arg0: i32) -> (i32, i32, i32) {
    %c0_i32 = arith.constant 0 : i32
    %c0_i32_0 = arith.constant 0 : i32
    %c0_i32_1 = arith.constant 0 : i32
    return %arg0, %c0_i32, %c0_i32_0 : i32, i32, i32
  }
  func.func @transform_1(%arg0: i32) -> (i32, i32, i32) {
    %c0_i32 = arith.constant 0 : i32
    %c0_i32_0 = arith.constant 0 : i32
    %c0_i32_1 = arith.constant 0 : i32
    return %arg0, %c0_i32, %c0_i32_0 : i32, i32, i32
  }
  func.func @transform_2(%arg0: i32) -> (i32, i32, i32) {
    %c0_i32 = arith.constant 0 : i32
    %c0_i32_0 = arith.constant 0 : i32
    %c0_i32_1 = arith.constant 0 : i32
    %c0_i32_2 = arith.constant 0 : i32
    return %c0_i32, %c0_i32_0, %c0_i32_1 : i32, i32, i32
  }
  func.func @transform_3(%arg0: i32) -> (i32, i32, i32) {
    %c0_i32 = arith.constant 0 : i32
    %c0_i32_0 = arith.constant 0 : i32
    %c0_i32_1 = arith.constant 0 : i32
    %c0_i32_2 = arith.constant 0 : i32
    return %c0_i32, %c0_i32_0, %c0_i32_1 : i32, i32, i32
  }
  func.func @transform_4(%arg0: i32) -> (i32, i32) {
    %c0_i32 = arith.constant 0 : i32
    %c0_i32_0 = arith.constant 0 : i32
    %c0_i32_1 = arith.constant 0 : i32
    return %c0_i32, %c0_i32_0 : i32, i32
  }
  func.func @transform_5(%arg0: i32) -> (i32, i32) {
    %c0_i32 = arith.constant 0 : i32
    %c0_i32_0 = arith.constant 0 : i32
    %c0_i32_1 = arith.constant 0 : i32
    return %c0_i32, %c0_i32_0 : i32, i32
  }
  func.func @transform_6(%arg0: i32) -> (i32, i32) {
    %c0_i32 = arith.constant 0 : i32
    %c0_i32_0 = arith.constant 0 : i32
    %c0_i32_1 = arith.constant 0 : i32
    return %c0_i32, %c0_i32_0 : i32, i32
  }
  func.func @transform_7(%arg0: i32) -> (i32, i32) {
    %c0_i32 = arith.constant 0 : i32
    %c0_i32_0 = arith.constant 0 : i32
    %c0_i32_1 = arith.constant 0 : i32
    return %c0_i32, %c0_i32_0 : i32, i32
  }
  func.func @transform_8(%arg0: i32) -> (i32, i32, i32) {
    %c0_i32 = arith.constant 0 : i32
    %c0_i32_0 = arith.constant 0 : i32
    %c0_i32_1 = arith.constant 0 : i32
    return %arg0, %c0_i32, %c0_i32_0 : i32, i32, i32
  }
}

</mosaic_0001>

<bundles_post_ra>
// kernel: mul.0
= control target key start
LH: loop header
LB: loop body
LE: loop exit
PB: predicated region body
PF: predicated region fallthrough
CT: control target
= control target key end

     0   :  { %s34_s0 = inlined_call_operand.vmem [shape: f32[40], index: 0, kind: input, shape index: {}]   ;;  %s35_s1 = inlined_call_operand.vmem [shape: f32[40], index: 1, kind: input, shape index: {}]   ;;  %s36_s2 = inlined_call_operand.vmem [shape: f32[40], index: 2, kind: output, shape index: {}]  }
   0x1   :  { %v3_v0 = vld [vmem:[%s34_s0] sm:$0x1] }
   0x2   :  { %v4_v1 = vld [vmem:[%s35_s1] sm:$0x1] }
   0x3   :  { %v7_v2 = vmul.f32 %v4_v1, %v3_v0 }
   0x5   :  { %9 = vst [vmem:[%s36_s2] sm:$0x1] %v7_v2 }

// kernel: gfc_forward.1
= control target key start
LH: loop header
LB: loop body
LE: loop exit
PB: predicated region body
PF: predicated region fallthrough
CT: control target
= control target key end

     0   :  { %vm54_vm0 = vcmask 261120   ;;  %v2595_v8 = vmov 0.0   ;;  %vm2596_vm1 = vmmov 0   ;;  %vm282_vm2 = vcmask 64512   ;;  %s2598_s27 = smov 24   ;;  %s2600_s10 = smov 8   ;;  %s3201_s2 = inlined_call_operand.vmem [shape: f32[3,32,32], index: 2, kind: input, shape index: {}]   ;;  %s3202_s0 = inlined_call_operand.vmem [shape: f32[2,8,32], index: 0, kind: input, shape index: {}]   ;;  %s3203_s3 = inlined_call_operand.vmem [shape: f32[3,1,32], index: 3, kind: input, shape index: {}]   ;;  %s3204_s1 = inlined_call_operand.vmem [shape: f32[2,1,8], index: 1, kind: input, shape index: {}]   ;;  %s3205_s4 = inlined_call_operand.vmem [shape: f32[32,32], index: 4, kind: input, shape index: {}]   ;;  %s3206_s5 = inlined_call_operand.vmem [shape: f32[1,32], index: 5, kind: input, shape index: {}]   ;;  %s3207_s8 = inlined_call_operand.vmem [shape: f32[2,1,168], index: 8, kind: output, shape index: {}]   ;;  %s3208_s6 = inlined_call_operand.vmem [shape: f32[32,16], index: 6, kind: input, shape index: {}]   ;;  %s3209_s7 = inlined_call_operand.vmem [shape: f32[1,16], index: 7, kind: input, shape index: {}]  }
   0x1   :  { %v43_v0 = vld [vmem:[%s3201_s2] sm:$0xff]  ;;  %v44_v1 = vld [vmem:[%s3201_s2 + $0x8] sm:$0xff]  ;;  %v45_v2 = vld [vmem:[%s3201_s2 + $0x10] sm:$0xff]  ;;  %2332 = vmatprep.subr.mxu1 %v2595_v8  ;;  %2334 = vmatprep.mubr.msk.f32.mxu1 %vm2596_vm1, %v2595_v8  ;;  %v307_v30 = vlaneseq  ;;  %vm495_vm3 = vcmask 1041409   ;;  %vm498_vm4 = vcmask 58368   ;;  %vm626_vm6 = vcmask 254976  }
   0x2   :  { %v2447_v3 = vpack.c.bf16 %v44_v1, %v43_v0  ;;  %v46_v4 = vld [vmem:[%s3201_s2 + $0x18] sm:$0xff]  ;;  %v2665_v5 = vld [vmem:[%s3202_s0] sm:$0xff]  ;;  %v2672_v7 = vld [vmem:[%s3202_s0 + $0x8] sm:$0xff]  ;;  %s2601_s15 = smov 56   ;;  %s2602_s16 = smov 16  }
   0x3   :  { %v2451_v6 = vpack.c.bf16 %v46_v4, %v45_v2  ;;  %2329 = vmatprep.mubr.msk.f32.mxu0 %vm54_vm0, %v2665_v5  ;;  %v2213_v9 = vld [vmem:[%s3203_s3] ss:$0 sm:$0xff]  ;;  %v2705_v32 = vshrl.u32 %v307_v30, 7  ;;  %v2722_v38 = vld [vmem:[%s3204_s1 + $0x1] sm:$0x1]  ;;  %v2223_v48 = vld [vmem:[%s3201_s2 + $0x28] sm:$0xff] }
   0x4   :  { %2448 = vmatprep.subr.bf16.mxu0 %v2447_v3  ;;  %v2713_v35 = vld [vmem:[%s3204_s1] sm:$0x1]  ;;  %v2224_v58 = vld [vmem:[%s3201_s2 + $0x30] sm:$0xff]  ;;  %v2225_v59 = vld [vmem:[%s3201_s2 + $0x38] sm:$0xff]  ;;  %vm579_vm5 = vcmp.lt.s32.totalorder %v307_v30, 8  ;;  %vm3057_vm7 = vcmp.ge.s32.totalorder %v307_v30, 24 }
   0x5   :  { %2450 = vmatpush3.bf16.msra.mxu0 %v2447_v3  ;;  %v2708_v34 = vsub.s32 0, %v2705_v32  ;;  %v2222_v47 = vld [vmem:[%s3201_s2 + $0x20] sm:$0xff]  ;;  %v2459_v60 = vpack.c.bf16 %v2225_v59, %v2224_v58  ;;  %vm3062_vm8 = vcmp.lt.s32.totalorder %v307_v30, 56  ;;  %vm3074_vm10 = vcmp.ge.s32.totalorder %v307_v30, 8  ;;  %s2603_s26 = smov 88   ;;  %s2604_s13 = smov 120  }
   0x6   :  { %2452 = vmatprep.subr.bf16.mxu0 %v2451_v6  ;;  %v2455_v49 = vpack.c.bf16 %v2223_v48, %v2222_v47  ;;  %v2227_v3 = vld [vmem:[%s3203_s3 + $0x1] ss:$0 sm:$0xff]  ;;  %vm621_vm9 = vmand %vm3057_vm7, %vm3062_vm8  ;;  %vm3079_vm11 = vcmp.lt.s32.totalorder %v307_v30, 16  ;;  %vm3095_vm13 = vcmp.ge.s32.totalorder %v307_v30, 56  ;;  %vm3100_vm14 = vcmp.lt.s32.totalorder %v307_v30, 88 }
   0x7   :  { %v2717_v36 = vrot.slane %v2713_v35, %v2708_v34  ;;  %v2727_v41 = vrot.slane %v2722_v38, %v2708_v34  ;;  %vm1291_vm12 = vmand %vm3074_vm10, %vm3079_vm11 }
   0x8   :  { %vm1332_vm15 = vmand %vm3095_vm13, %vm3100_vm14  ;;  %vm2205_vm13 = vcmp.lt.s32.totalorder %v307_v30, 40 }
   0x9   :  { %2454 = vmatpush3.bf16.msra.mxu0 %v2451_v6 }
   0xa   :  { %2342 = vmatprep.subr.mxu0 %v2595_v8 }
   0xc   :  { %2330 = vmatmul.mubr.msk.f32.vlgmr.msra.gmra.mrb[0].mxu0 %vm54_vm0, %v2672_v7 }
   0xd   :  { %2343 = vmatpush3.msra.mxu0 %v2665_v5  ;;  %2344 = vmatprep.mubr.msk.f32.mxu0 %vm2596_vm1, %v2595_v8 }
   0xe   :  { %2456 = vmatprep.subr.bf16.mxu0 %v2455_v49 }
  0xdf   :  { %v2331_v10 = vpop.f32.mrb[0].mxu0 }
  0xe0   :  { %v127_v11 = vpop.f32.mrb[1].mxu0  ;;  %v133_v13 = vadd.f32 %v2331_v10, %v2213_v9 }
  0xe1   :  { %v128_v12 = vadd.f32 %v2213_v9, %v127_v11 }
  0xe3   :  { %2333 = vmatpush3.xpose.msk.msra.mxu1 %vm54_vm0, %v128_v12 }
  0xe4   :  { %2337 = vmatprep.subr.mxu1 %v2595_v8 }
  0xe6   :  { %2335 = vmatmul.mubr.msk.f32.vlgmr.msra.gmra.mrb[0].mxu1 %vm54_vm0, %v2665_v5 }
  0xe7   :  { %2338 = vmatpush3.xpose.msk.msra.mxu1 %vm54_vm0, %v133_v13  ;;  %2339 = vmatprep.mubr.msk.f32.mxu1 %vm2596_vm1, %v2595_v8 }
  0xe8   :  { %2347 = vmatprep.subr.mxu1 %v2595_v8 }
  0xea   :  { %2340 = vmatmul.mubr.msk.f32.vlgmr.msra.gmra.mrb[2].mxu1 %vm54_vm0, %v2672_v7 }
  0xeb   :  { %2348 = vmatpush3.msra.mxu1 %v2672_v7  ;;  %2349 = vmatprep.mubr.msk.f32.mxu1 %vm2596_vm1, %v2595_v8 }
  0xec   :  { %2363 = vmatprep.subr.mxu1 %v2595_v8 }
 0x1b9   :  { %v205_v14 = vpop.f32.mrb[0].mxu1 }
 0x1ba   :  { %v2336_v15 = vpop.f32.mrb[1].mxu1  ;;  %v283_v16 = vsel %vm282_vm2, %v205_v14, -inf }
 0x1bb   :  { %284 = vmax.xlane.f32.xlu0 %v283_v16 }
 0x1bd   :  { %v278_v17 = vpop.f32.mrb[2].mxu1 }
 0x1be   :  { %v2341_v18 = vpop.f32.mrb[3].mxu1  ;;  %v286_v19 = vsel %vm282_vm2, %v278_v17, -inf }
 0x1bf   :  { %287 = vmax.xlane.f32.xlu0 %v286_v19 }
 0x248   :  { %v285_v20 = vpop.xlane.xlu0 %284 }
 0x249   :  { %v289_v21 = vsub.f32 %v205_v14, %v285_v20 }
 0x24b   :  { %v291_v22 = vmul.f32 1.442695, %v289_v21 }
 0x24c   :  { %v288_v23 = vpop.xlane.xlu0 %287 }
 0x24d   :  { %2503 = vpow2.f32 %v291_v22  ;;  %v290_v24 = vsub.f32 %v278_v17, %v288_v23 }
 0x24f   :  { %v293_v25 = vmul.f32 1.442695, %v290_v24 }
 0x251   :  { %2505 = vpow2.f32 %v293_v25 }
 0x257   :  { %v2504_v26 = vpop.eup %2503 }
 0x258   :  { %v295_v27 = vsel %vm282_vm2, %v2504_v26, 0.0 }
 0x259   :  { %296 = vadd.xlane.f32.xlu1 %v295_v27 }
 0x25b   :  { %v2506_v28 = vpop.eup %2505 }
 0x25c   :  { %v298_v29 = vsel %vm282_vm2, %v2506_v28, 0.0 }
 0x25d   :  { %299 = vadd.xlane.f32.xlu1 %v298_v29 }
 0x2e6   :  { %v297_v31 = vpop.xlane.xlu1 %296 }
 0x2e7   :  { %2507 = vrcp.f32 %v297_v31 }
 0x2ea   :  { %v300_v33 = vpop.xlane.xlu1 %299 }
 0x2eb   :  { %2509 = vrcp.f32 %v300_v33 }
 0x2f1   :  { %v2508_v37 = vpop.eup %2507 }
 0x2f2   :  { %v302_v39 = vmul.f32 %v2508_v37, %v2504_v26 }
 0x2f4   :  { %v317_v40 = vmul.f32 %v2717_v36, %v302_v39 }
 0x2f5   :  { %v2510_v42 = vpop.eup %2509 }
 0x2f6   :  { %v319_v43 = vsel %vm282_vm2, %v317_v40, 0.0  ;;  %v304_v44 = vmul.f32 %v2510_v42, %v2506_v28 }
 0x2f7   :  { %320 = vadd.xlane.f32.xlu0 %v319_v43 }
 0x2f8   :  { %v318_v45 = vmul.f32 %v2727_v41, %v304_v44  ;;  %v33_v44 = vld [vmem:[%s3205_s4] sm:$0xff] }
 0x2fa   :  { %v322_v46 = vsel %vm282_vm2, %v318_v45, 0.0 }
 0x2fb   :  { %323 = vadd.xlane.f32.xlu1 %v322_v46 }
 0x384   :  { %v321_v50 = vpop.xlane.xlu0 %320 }
 0x385   :  { %v325_v51 = vadd.f32 1e-06, %v321_v50 }
 0x387   :  { %2511 = vrcp.f32 %v325_v51  ;;  %v35_v51 = vld [vmem:[%s3205_s4 + $0x10] sm:$0xff] }
 0x388   :  { %v324_v52 = vpop.xlane.xlu1 %323 }
 0x389   :  { %v326_v53 = vadd.f32 1e-06, %v324_v52  ;;  %v36_v52 = vld [vmem:[%s3205_s4 + $0x18] sm:$0xff] }
 0x38b   :  { %2513 = vrcp.f32 %v326_v53 }
 0x391   :  { %v2512_v54 = vpop.eup %2511 }
 0x392   :  { %v2738_v55 = vmul.f32 %v2512_v54, %v317_v40 }
 0x394   :  { %2345 = vmatmul.mubr.msk.f32.vlgmr.msra.gmra.mrb[2].mxu0 %vm282_vm2, %v2738_v55 }
 0x395   :  { %v2514_v56 = vpop.eup %2513  ;;  %2458 = vmatpush3.bf16.msra.mxu0 %v2455_v49 }
 0x396   :  { %v2742_v57 = vmul.f32 %v2514_v56, %v318_v45  ;;  %2460 = vmatprep.subr.bf16.mxu0 %v2459_v60  ;;  %v34_v45 = vld [vmem:[%s3205_s4 + $0x8] sm:$0xff]  ;;  %v2815_v56 = vpack.c.bf16 %v36_v52, %v35_v51 }
 0x397   :  { %v2804_v46 = vpack.c.bf16 %v34_v45, %v33_v44 }
 0x398   :  { %2350 = vmatmul.mubr.msk.f32.vlgmr.msra.gmra.mrb[4].mxu1 %vm282_vm2, %v2742_v57 }
 0x399   :  { %2365 = vmatprep.mubr.msk.f32.mxu1 %vm2596_vm1, %v2595_v8  ;;  %2462 = vmatpush3.bf16.msra.mxu0 %v2459_v60  ;;  %v2241_v60 = vld [vmem:[%s3201_s2 + $0x40] sm:$0xff] }
 0x39a   :  { %2373 = vmatprep.subr.mxu0 %v2595_v8 }
 0x467   :  { %v2755_v61 = vpop.f32.mrb[2].mxu0 }
 0x468   :  { %v2759_v62 = vadd.f32 %v2755_v61, %v2665_v5  ;;  %v2346_v63 = vpop.f32.mrb[3].mxu0 }
 0x469   :  { %v2242_v63 = vld [vmem:[%s3201_s2 + $0x48] sm:$0xff] }
 0x46a   :  { %2360 = vmatprep.mubr.msk.f32.mxu0 %vm54_vm0, %v2759_v62 }
 0x46b   :  { %v2763_v0 = vpop.f32.mrb[4].mxu1 }
 0x46c   :  { %v2767_v1 = vadd.f32 %v2763_v0, %v2672_v7  ;;  %v2351_v2 = vpop.f32.mrb[5].mxu1 }
 0x46d   :  { %v2243_v2 = vld [vmem:[%s3201_s2 + $0x50] sm:$0xff] }
 0x46e   :  { %2361 = vmatmul.mubr.msk.f32.vlgmr.msra.gmra.mrb[4].mxu0 %vm54_vm0, %v2767_v1 }
 0x46f   :  { %2374 = vmatpush3.msra.mxu0 %v2759_v62  ;;  %2375 = vmatprep.mubr.msk.f32.mxu0 %vm2596_vm1, %v2595_v8 }
 0x470   :  { %2464 = vmatprep.subr.bf16.mxu0 %v2804_v46 }
 0x541   :  { %v2362_v4 = vpop.f32.mrb[4].mxu0 }
 0x542   :  { %v713_v6 = vpop.f32.mrb[5].mxu0  ;;  %v719_v10 = vadd.f32 %v2362_v4, %v2227_v3  ;;  %v2244_v4 = vld [vmem:[%s3201_s2 + $0x58] sm:$0xff] }
 0x543   :  { %v714_v9 = vadd.f32 %v2227_v3, %v713_v6  ;;  %v2471_v3 = vpack.c.bf16 %v2242_v63, %v2241_v60  ;;  %v2475_v6 = vpack.c.bf16 %v2244_v4, %v2243_v2 }
 0x545   :  { %2364 = vmatpush3.xpose.msk.msra.mxu1 %vm54_vm0, %v714_v9 }
 0x546   :  { %2368 = vmatprep.subr.mxu1 %v2595_v8 }
 0x548   :  { %2366 = vmatmul.mubr.msk.f32.vlgmr.msra.gmra.mrb[6].mxu1 %vm54_vm0, %v2665_v5 }
 0x549   :  { %2369 = vmatpush3.xpose.msk.msra.mxu1 %vm54_vm0, %v719_v10  ;;  %2370 = vmatprep.mubr.msk.f32.mxu1 %vm2596_vm1, %v2595_v8 }
 0x54a   :  { %2378 = vmatprep.subr.mxu1 %v2595_v8 }
 0x54c   :  { %2371 = vmatmul.mubr.msk.f32.vlgmr.msra.gmra.mrb[8].mxu1 %vm54_vm0, %v2672_v7 }
 0x54d   :  { %2379 = vmatpush3.msra.mxu1 %v2767_v1  ;;  %2380 = vmatprep.mubr.msk.f32.mxu1 %vm2596_vm1, %v2595_v8 }
 0x54e   :  { %2472 = vmatprep.subr.bf16.mxu1 %v2471_v3 }
 0x61b   :  { %v791_v11 = vpop.f32.mrb[6].mxu1 }
 0x61c   :  { %v2367_v12 = vpop.f32.mrb[7].mxu1  ;;  %v868_v13 = vsel %vm282_vm2, %v791_v11, -inf }
 0x61d   :  { %869 = vmax.xlane.f32.xlu0 %v868_v13  ;;  %v2849_v13 = vld [vmem:[%s3206_s5] ss:$0 sm:$0xff] }
 0x61f   :  { %v864_v14 = vpop.f32.mrb[8].mxu1 }
 0x620   :  { %v871_v15 = vsel %vm282_vm2, %v864_v14, -inf  ;;  %v2372_v16 = vpop.f32.mrb[9].mxu1 }
 0x621   :  { %872 = vmax.xlane.f32.xlu1 %v871_v15 }
 0x6aa   :  { %v870_v17 = vpop.xlane.xlu0 %869 }
 0x6ab   :  { %v874_v18 = vsub.f32 %v791_v11, %v870_v17 }
 0x6ad   :  { %v876_v19 = vmul.f32 1.442695, %v874_v18 }
 0x6ae   :  { %v873_v20 = vpop.xlane.xlu1 %872 }
 0x6af   :  { %2515 = vpow2.f32 %v876_v19  ;;  %v875_v21 = vsub.f32 %v864_v14, %v873_v20 }
 0x6b1   :  { %v878_v22 = vmul.f32 1.442695, %v875_v21 }
 0x6b3   :  { %2517 = vpow2.f32 %v878_v22 }
 0x6b9   :  { %v2516_v23 = vpop.eup %2515 }
 0x6ba   :  { %v880_v24 = vsel %vm282_vm2, %v2516_v23, 0.0 }
 0x6bb   :  { %881 = vadd.xlane.f32.xlu0 %v880_v24 }
 0x6bd   :  { %v2518_v25 = vpop.eup %2517 }
 0x6be   :  { %v883_v26 = vsel %vm282_vm2, %v2518_v25, 0.0 }
 0x6bf   :  { %884 = vadd.xlane.f32.xlu1 %v883_v26 }
 0x748   :  { %v882_v27 = vpop.xlane.xlu0 %881 }
 0x749   :  { %2519 = vrcp.f32 %v882_v27 }
 0x74c   :  { %v885_v28 = vpop.xlane.xlu1 %884 }
 0x74d   :  { %2521 = vrcp.f32 %v885_v28 }
 0x753   :  { %v2520_v29 = vpop.eup %2519 }
 0x754   :  { %v887_v31 = vmul.f32 %v2520_v29, %v2516_v23 }
 0x756   :  { %v890_v33 = vmul.f32 %v887_v31, %v2717_v36 }
 0x757   :  { %v2522_v37 = vpop.eup %2521 }
 0x758   :  { %v892_v39 = vsel %vm282_vm2, %v890_v33, 0.0  ;;  %v889_v40 = vmul.f32 %v2522_v37, %v2518_v25 }
 0x759   :  { %893 = vadd.xlane.f32.xlu0 %v892_v39 }
 0x75a   :  { %v891_v42 = vmul.f32 %v889_v40, %v2727_v41 }
 0x75c   :  { %v895_v43 = vsel %vm282_vm2, %v891_v42, 0.0 }
 0x75d   :  { %896 = vadd.xlane.f32.xlu1 %v895_v43 }
 0x7e6   :  { %v894_v47 = vpop.xlane.xlu0 %893 }
 0x7e7   :  { %v898_v48 = vadd.f32 1e-06, %v894_v47 }
 0x7e9   :  { %2523 = vrcp.f32 %v898_v48 }
 0x7ea   :  { %v897_v49 = vpop.xlane.xlu1 %896 }
 0x7eb   :  { %v899_v50 = vadd.f32 1e-06, %v897_v49 }
 0x7ed   :  { %2525 = vrcp.f32 %v899_v50 }
 0x7f3   :  { %v2524_v53 = vpop.eup %2523 }
 0x7f4   :  { %v2813_v54 = vmul.f32 %v2524_v53, %v890_v33 }
 0x7f6   :  { %2376 = vmatmul.mubr.msk.f32.vlgmr.msra.gmra.mrb[6].mxu0 %vm282_vm2, %v2813_v54 }
 0x7f7   :  { %v2526_v58 = vpop.eup %2525  ;;  %2466 = vmatpush3.bf16.msra.mxu0 %v2804_v46  ;;  %2391 = vmatprep.mubr.msk.f32.mxu0 %vm54_vm0, %v2755_v61 }
 0x7f8   :  { %2468 = vmatprep.subr.bf16.mxu0 %v2815_v56  ;;  %v2823_v59 = vmul.f32 %v2526_v58, %v891_v42 }
 0x7fa   :  { %2381 = vmatmul.mubr.msk.f32.vlgmr.msra.gmra.mrb[10].mxu1 %vm282_vm2, %v2823_v59 }
 0x7fb   :  { %2470 = vmatpush3.bf16.msra.mxu0 %v2815_v56  ;;  %2474 = vmatpush3.bf16.msra.mxu1 %v2471_v3 }
 0x7fc   :  { %2405 = vmatprep.subr.mxu0 %v2595_v8  ;;  %2476 = vmatprep.subr.bf16.mxu1 %v2475_v6 }
 0x7fe   :  { %2392 = vmatmul.mubr.msk.f32.vlgmr.msra.gmra.mrb[8].mxu0 %vm54_vm0, %v2763_v0 }
 0x7ff   :  { %2407 = vmatprep.mubr.msk.f32.mxu0 %vm2596_vm1, %v2595_v8  ;;  %2478 = vmatpush3.bf16.msra.mxu1 %v2475_v6 }
 0x800   :  { %2410 = vmatprep.subr.mxu1 %v2595_v8 }
 0x8c9   :  { %v973_v9 = vpop.f32.mrb[6].mxu0 }
 0x8ca   :  { %v2377_v10 = vpop.f32.mrb[7].mxu0  ;;  %v1151_v28 = vadd.f32 %v973_v9, %v2665_v5 }
 0x8cb   :  { %v486_v10 = vsel %vm282_vm2, %v2742_v57, 0.0 }
 0x8cd   :  { %v1046_v11 = vpop.f32.mrb[10].mxu1 }
 0x8ce   :  { %v2382_v12 = vpop.f32.mrb[11].mxu1  ;;  %v1152_v26 = vadd.f32 %v1046_v11, %v2672_v7 }
 0x8d1   :  { %v2393_v14 = vpop.f32.mrb[8].mxu0 }
 0x8d2   :  { %v1134_v15 = vadd.f32 %v2393_v14, %v2849_v13  ;;  %v1128_v16 = vpop.f32.mrb[9].mxu0  ;;  %v479_v14 = vsel %vm282_vm2, %v2738_v55, 0.0 }
 0x8d3   :  { %v1129_v17 = vadd.f32 %v2849_v13, %v1128_v16 }
 0x8d4   :  { %v2240_v18 = vmul.f32 -1.442695, %v1134_v15  ;;  %v487_v15 = vrot.slane %v486_v10, 4 }
 0x8d5   :  { %v2239_v19 = vmul.f32 -1.442695, %v1129_v17  ;;  %v480_v17 = vrot.slane %v479_v14, 4 }
 0x8d6   :  { %2527 = vpow2.f32 %v2240_v18 }
 0x8d7   :  { %2529 = vpow2.f32 %v2239_v19  ;;  %v488_v19 = vadd.f32 %v487_v15, %v486_v10 }
 0x8d9   :  { %v489_v57 = vrot.slane %v488_v19, 2 }
 0x8e0   :  { %v2528_v20 = vpop.eup %2527 }
 0x8e1   :  { %v2530_v21 = vpop.eup %2529  ;;  %v1144_v22 = vadd.f32 1.0, %v2528_v20 }
 0x8e2   :  { %v1143_v23 = vadd.f32 1.0, %v2530_v21 }
 0x8e3   :  { %2531 = vrcp.f32 %v1144_v22  ;;  %v481_v22 = vadd.f32 %v480_v17, %v479_v14 }
 0x8e4   :  { %2533 = vrcp.f32 %v1143_v23 }
 0x8ed   :  { %v2532_v24 = vpop.eup %2531 }
 0x8ee   :  { %v2534_v25 = vpop.eup %2533  ;;  %v1150_v27 = vmul.f32 %v2532_v24, %v2763_v0 }
 0x8ef   :  { %v1149_v29 = vmul.f32 %v2534_v25, %v2755_v61  ;;  %v2246_v61 = vld [vmem:[%s3203_s3 + $0x2] ss:$0 sm:$0xff]  ;;  %v482_v25 = vrot.slane %v481_v22, 2 }
 0x8f0   :  { %v2857_v31 = vadd.f32 %v1152_v26, %v1150_v27  ;;  %v2859_v33 = vadd.f32 %v1150_v27, %v1046_v11  ;;  %v1157_v11 = vsel %vm282_vm2, %v2813_v54, 0.0  ;;  %v490_v26 = vadd.f32 %v489_v57, %v488_v19 }
 0x8f1   :  { %v2861_v37 = vadd.f32 %v1151_v28, %v1149_v29  ;;  %v2863_v39 = vadd.f32 %v1149_v29, %v973_v9  ;;  %v1164_v9 = vsel %vm282_vm2, %v2823_v59, 0.0  ;;  %v1158_v16 = vrot.slane %v1157_v11, 4 }
 0x8f2   :  { %v1165_v12 = vrot.slane %v1164_v9, 4  ;;  %v483_v28 = vadd.f32 %v482_v25, %v481_v22  ;;  %v491_v29 = vrot.slane %v490_v26, 1 }
 0x8f3   :  { %2402 = vmatprep.mubr.msk.f32.mxu1 %vm54_vm0, %v2861_v37  ;;  %v1159_v20 = vadd.f32 %v1158_v16, %v1157_v11 }
 0x8f4   :  { %2403 = vmatmul.mubr.msk.f32.vlgmr.msra.gmra.mrb[12].mxu1 %vm54_vm0, %v2857_v31  ;;  %v1166_v18 = vadd.f32 %v1165_v12, %v1164_v9 }
 0x8f5   :  { %2412 = vmatprep.mubr.msk.f32.mxu1 %vm2596_vm1, %v2595_v8  ;;  %v1160_v24 = vrot.slane %v1159_v20, 2 }
 0x8f6   :  { %v1167_v23 = vrot.slane %v1166_v18, 2 }
 0x8f7   :  { %v1161_v27 = vadd.f32 %v1160_v24, %v1159_v20 }
 0x8f8   :  { %v1168_v54 = vadd.f32 %v1167_v23, %v1166_v18 }
 0x8fa   :  { %v1169_v55 = vrot.slane %v1168_v54, 1 }
 0x9c7   :  { %v2404_v0 = vpop.f32.mrb[12].mxu1 }
 0x9c8   :  { %v1429_v40 = vadd.f32 %v2404_v0, %v2246_v61  ;;  %v1423_v42 = vpop.f32.mrb[13].mxu1  ;;  %v1162_v0 = vrot.slane %v1161_v27, 1 }
 0x9c9   :  { %v1424_v43 = vadd.f32 %v2246_v61, %v1423_v42 }
 0x9ca   :  { %2411 = vmatpush3.xpose.msk.msra.mxu1 %vm54_vm0, %v1429_v40 }
 0x9cb   :  { %2406 = vmatpush3.xpose.msk.msra.mxu0 %vm54_vm0, %v1424_v43  ;;  %2420 = vmatprep.subr.mxu1 %v2595_v8  ;;  %v484_v43 = vrot.slane %v483_v28, 1 }
 0x9cc   :  { %2415 = vmatprep.subr.mxu0 %v2595_v8 }
 0x9cd   :  { %2413 = vmatmul.mubr.msk.f32.vlgmr.msra.gmra.mrb[14].mxu1 %vm54_vm0, %v2672_v7 }
 0x9ce   :  { %2408 = vmatmul.mubr.msk.f32.vlgmr.msra.gmra.mrb[10].mxu0 %vm54_vm0, %v2665_v5  ;;  %2421 = vmatpush3.msra.mxu1 %v2857_v31 }
 0x9cf   :  { %2416 = vmatpush3.msra.mxu0 %v2861_v37  ;;  %2422 = vmatprep.mubr.msk.f32.mxu1 %vm2596_vm1, %v2595_v8 }
 0x9d0   :  { %2417 = vmatprep.mubr.msk.f32.mxu0 %vm2596_vm1, %v2595_v8  ;;  %2480 = vmatprep.subr.bf16.mxu0 %v2804_v46 }
 0xaa0   :  { %v1574_v44 = vpop.f32.mrb[14].mxu1 }
 0xaa1   :  { %v1501_v45 = vpop.f32.mrb[10].mxu0  ;;  %v1581_v47 = vsel %vm282_vm2, %v1574_v44, -inf  ;;  %v2414_v48 = vpop.f32.mrb[15].mxu1 }
 0xaa2   :  { %1582 = vmax.xlane.f32.xlu1 %v1581_v47  ;;  %v2409_v49 = vpop.f32.mrb[11].mxu0  ;;  %v1578_v50 = vsel %vm282_vm2, %v1501_v45, -inf  ;;  %v492_v48 = vadd.f32 %v491_v29, %v490_v26 }
 0xaa3   :  { %1579 = vmax.xlane.f32.xlu0 %v1578_v50  ;;  %v1163_v50 = vadd.f32 %v1162_v0, %v1161_v27 }
 0xb2f   :  { %v1583_v51 = vpop.xlane.xlu1 %1582 }
 0xb30   :  { %v1585_v52 = vsub.f32 %v1574_v44, %v1583_v51  ;;  %v1580_v53 = vpop.xlane.xlu0 %1579 }
 0xb31   :  { %v1584_v58 = vsub.f32 %v1501_v45, %v1580_v53  ;;  %v1170_v45 = vadd.f32 %v1169_v55, %v1168_v54 }
 0xb32   :  { %v1588_v60 = vmul.f32 1.442695, %v1585_v52  ;;  %v485_v52 = vadd.f32 %v484_v43, %v483_v28 }
 0xb33   :  { %v1586_v63 = vmul.f32 1.442695, %v1584_v58  ;;  %v1173_v58 = vsel %vm495_vm3, %v1170_v45, %v1163_v50 }
 0xb34   :  { %2535 = vpow2.f32 %v1588_v60  ;;  %v496_v60 = vsel %vm495_vm3, %v492_v48, %v485_v52 }
 0xb35   :  { %2537 = vpow2.f32 %v1586_v63  ;;  %v1175_v63 = vsel %vm498_vm4, %v1173_v58, -inf }
 0xb3e   :  { %v2536_v2 = vpop.eup %2535 }
 0xb3f   :  { %v2538_v3 = vpop.eup %2537  ;;  %v1593_v4 = vsel %vm282_vm2, %v2536_v2, 0.0 }
 0xb40   :  { %1594 = vadd.xlane.f32.xlu1 %v1593_v4  ;;  %v1590_v6 = vsel %vm282_vm2, %v2538_v3, 0.0 }
 0xb41   :  { %1591 = vadd.xlane.f32.xlu0 %v1590_v6 }
 0xbcd   :  { %v1595_v21 = vpop.xlane.xlu1 %1594 }
 0xbce   :  { %2539 = vrcp.f32 %v1595_v21  ;;  %v1592_v59 = vpop.xlane.xlu0 %1591 }
 0xbcf   :  { %2541 = vrcp.f32 %v1592_v59 }
 0xbd8   :  { %v2540_v61 = vpop.eup %2539 }
 0xbd9   :  { %v2542_v40 = vpop.eup %2541  ;;  %v1599_v42 = vmul.f32 %v2540_v61, %v2536_v2 }
 0xbda   :  { %v1597_v44 = vmul.f32 %v2542_v40, %v2538_v3 }
 0xbdb   :  { %v1601_v47 = vmul.f32 %v1599_v42, %v2727_v41  ;;  %v499_v41 = vsel %vm498_vm4, %v496_v60, -inf }
 0xbdc   :  { %v1600_v49 = vmul.f32 %v1597_v44, %v2717_v36 }
 0xbdd   :  { %v1605_v51 = vsel %vm282_vm2, %v1601_v47, 0.0 }
 0xbde   :  { %1606 = vadd.xlane.f32.xlu1 %v1605_v51  ;;  %v1602_v53 = vsel %vm282_vm2, %v1600_v49, 0.0 }
 0xbdf   :  { %1603 = vadd.xlane.f32.xlu0 %v1602_v53 }
 0xbe2   :  { %1176 = vmax.xlane.f32.xlu1 %v1175_v63 }
 0xbe3   :  { %500 = vmax.xlane.f32.xlu0 %v499_v41 }
 0xc6b   :  { %v1607_v36 = vpop.xlane.xlu1 %1606 }
 0xc6c   :  { %v1609_v2 = vadd.f32 1e-06, %v1607_v36  ;;  %v1604_v3 = vpop.xlane.xlu0 %1603 }
 0xc6d   :  { %v1608_v4 = vadd.f32 1e-06, %v1604_v3 }
 0xc6e   :  { %2543 = vrcp.f32 %v1609_v2 }
 0xc6f   :  { %2545 = vrcp.f32 %v1608_v4  ;;  %v1177_v6 = vpop.xlane.xlu1 %1176 }
 0xc70   :  { %v1179_v9 = vrot.slane %v1177_v6, 1  ;;  %v501_v10 = vpop.xlane.xlu0 %500  ;;  %v1182_v20 = vsub.f32 %v1163_v50, %v1177_v6 }
 0xc71   :  { %v503_v11 = vrot.slane %v501_v10, 1  ;;  %v506_v12 = vsub.f32 %v485_v52, %v501_v10 }
 0xc72   :  { %v1183_v14 = vsub.f32 %v1170_v45, %v1179_v9  ;;  %v1184_v57 = vmul.f32 1.442695, %v1182_v20 }
 0xc73   :  { %v507_v15 = vsub.f32 %v492_v48, %v503_v11  ;;  %v508_v16 = vmul.f32 1.442695, %v506_v12 }
 0xc74   :  { %v1186_v18 = vmul.f32 1.442695, %v1183_v14 }
 0xc75   :  { %v510_v17 = vmul.f32 1.442695, %v507_v15 }
 0xc77   :  { %2547 = vpow2.f32 %v510_v17 }
 0xc78   :  { %v2544_v19 = vpop.eup %2543  ;;  %2549 = vpow2.f32 %v508_v16 }
 0xc79   :  { %v2546_v21 = vpop.eup %2545  ;;  %v1613_v22 = vmul.f32 %v2544_v19, %v1601_v47  ;;  %2551 = vpow2.f32 %v1186_v18 }
 0xc7a   :  { %v1611_v59 = vmul.f32 %v2546_v21, %v1600_v49  ;;  %2553 = vpow2.f32 %v1184_v57 }
 0xc7b   :  { %2423 = vmatmul.mubr.msk.f32.vlgmr.msra.gmra.mrb[16].mxu1 %vm282_vm2, %v1613_v22  ;;  %v1866_v23 = vsel %vm282_vm2, %v1613_v22, 0.0 }
 0xc7c   :  { %2418 = vmatmul.mubr.msk.f32.vlgmr.msra.gmra.mrb[12].mxu0 %vm282_vm2, %v1611_v59  ;;  %v1859_v24 = vsel %vm282_vm2, %v1611_v59, 0.0  ;;  %v1867_v25 = vrot.slane %v1866_v23, 4  ;;  %2444 = vmatprep.mubr.msk.f32.mxu1 %vm2596_vm1, %v2595_v8  ;;  %vm3115_vm1 = vcmp.ge.s32.totalorder %v307_v30, 16  ;;  %vm3120_vm2 = vcmp.lt.s32.totalorder %v307_v30, 24 }
 0xc7d   :  { %2482 = vmatpush3.bf16.msra.mxu0 %v2804_v46  ;;  %2433 = vmatprep.mubr.msk.f32.mxu0 %vm54_vm0, %v2863_v39  ;;  %v1860_v54 = vrot.slane %v1859_v24, 4 }
 0xc7e   :  { %2484 = vmatprep.subr.bf16.mxu0 %v2815_v56  ;;  %v1868_v26 = vadd.f32 %v1867_v25, %v1866_v23 }
 0xc7f   :  { %v1861_v27 = vadd.f32 %v1860_v54, %v1859_v24 }
 0xc80   :  { %v1869_v28 = vrot.slane %v1868_v26, 2 }
 0xc81   :  { %v2548_v55 = vpop.eup %2547  ;;  %2486 = vmatpush3.bf16.msra.mxu0 %v2815_v56  ;;  %v1862_v29 = vrot.slane %v1861_v27, 2 }
 0xc82   :  { %v514_v61 = vrot.slane %v2548_v55, 7  ;;  %v1870_v0 = vadd.f32 %v1869_v28, %v1868_v26  ;;  %v2550_v40 = vpop.eup %2549 }
 0xc83   :  { %v1863_v8 = vadd.f32 %v1862_v29, %v1861_v27  ;;  %v2552_v42 = vpop.eup %2551 }
 0xc84   :  { %2434 = vmatmul.mubr.msk.f32.vlgmr.msra.gmra.mrb[14].mxu0 %vm54_vm0, %v2859_v33  ;;  %v515_v46 = vsel %vm495_vm3, %v514_v61, %v2550_v40  ;;  %v1871_v43 = vrot.slane %v1870_v0, 1  ;;  %v1190_v49 = vrot.slane %v2552_v42, 7  ;;  %v2554_v50 = vpop.eup %2553 }
 0xc85   :  { %v517_v44 = vsel %vm498_vm4, %v515_v46, 0.0  ;;  %v1864_v45 = vrot.slane %v1863_v8, 1 }
 0xc86   :  { %518 = vadd.xlane.f32.xlu1 %v517_v44  ;;  %v1872_v47 = vadd.f32 %v1871_v43, %v1870_v0  ;;  %v1191_v52 = vsel %vm495_vm3, %v1190_v49, %v2554_v50 }
 0xc87   :  { %v1865_v48 = vadd.f32 %v1864_v45, %v1863_v8  ;;  %v1193_v53 = vsel %vm498_vm4, %v1191_v52, 0.0 }
 0xc89   :  { %v1875_v56 = vsel %vm495_vm3, %v1872_v47, %v1865_v48 }
 0xc8a   :  { %v1877_v51 = vsel %vm498_vm4, %v1875_v56, -inf }
 0xc8b   :  { %1878 = vmax.xlane.f32.xlu0 %v1877_v51 }
 0xc8f   :  { %1194 = vadd.xlane.f32.xlu0 %v1193_v53 }
 0xd13   :  { %v519_v58 = vpop.xlane.xlu1 %518 }
 0xd14   :  { %v521_v60 = vrot.slane %v519_v58, 1  ;;  %2555 = vrcp.f32 %v519_v58 }
 0xd16   :  { %2557 = vrcp.f32 %v521_v60 }
 0xd18   :  { %v1879_v63 = vpop.xlane.xlu0 %1878 }
 0xd19   :  { %v1881_v41 = vrot.slane %v1879_v63, 1  ;;  %v1884_v36 = vsub.f32 %v1865_v48, %v1879_v63 }
 0xd1b   :  { %v1885_v2 = vsub.f32 %v1872_v47, %v1881_v41  ;;  %v1886_v4 = vmul.f32 1.442695, %v1884_v36 }
 0xd1c   :  { %v1195_v3 = vpop.xlane.xlu0 %1194 }
 0xd1d   :  { %v1888_v6 = vmul.f32 1.442695, %v1885_v2  ;;  %v1197_v9 = vrot.slane %v1195_v3, 1  ;;  %2559 = vrcp.f32 %v1195_v3 }
 0xd1e   :  { %v2556_v10 = vpop.eup %2555 }
 0xd1f   :  { %2561 = vpow2.f32 %v1888_v6  ;;  %v525_v12 = vmul.f32 %v2556_v10, %v2550_v40 }
 0xd20   :  { %v2558_v11 = vpop.eup %2557  ;;  %2563 = vrcp.f32 %v1197_v9 }
 0xd21   :  { %2565 = vpow2.f32 %v1886_v4  ;;  %v527_v14 = vmul.f32 %v2558_v11, %v2548_v55  ;;  %v2932_v16 = vmul.f32 %v525_v12, %v2713_v35 }
 0xd23   :  { %v2929_v15 = vmul.f32 %v527_v14, %v2722_v38 }
 0xd25   :  { %v532_v17 = vrot.slane %v2929_v15, 7 }
 0xd27   :  { %v533_v18 = vsel %vm495_vm3, %v532_v17, %v2932_v16  ;;  %v2560_v19 = vpop.eup %2559 }
 0xd28   :  { %v535_v20 = vsel %vm498_vm4, %v533_v18, 0.0  ;;  %v1201_v57 = vmul.f32 %v2560_v19, %v2554_v50 }
 0xd29   :  { %v2938_v21 = vpop.eup %2561  ;;  %536 = vadd.xlane.f32.xlu0 %v535_v20 }
 0xd2a   :  { %v2564_v22 = vpop.eup %2563  ;;  %v1892_v59 = vrot.slane %v2938_v21, 7  ;;  %v2950_v27 = vmul.f32 %v1201_v57, %v2713_v35 }
 0xd2b   :  { %v2941_v23 = vpop.eup %2565  ;;  %v1203_v24 = vmul.f32 %v2564_v22, %v2552_v42 }
 0xd2c   :  { %v1893_v25 = vsel %vm495_vm3, %v1892_v59, %v2941_v23 }
 0xd2d   :  { %v1895_v54 = vsel %vm498_vm4, %v1893_v25, 0.0  ;;  %v2947_v26 = vmul.f32 %v1203_v24, %v2722_v38 }
 0xd2e   :  { %1896 = vadd.xlane.f32.xlu1 %v1895_v54 }
 0xd2f   :  { %v1208_v28 = vrot.slane %v2947_v26, 7 }
 0xd31   :  { %v1209_v55 = vsel %vm495_vm3, %v1208_v28, %v2950_v27 }
 0xd32   :  { %v1211_v29 = vsel %vm498_vm4, %v1209_v55, 0.0 }
 0xd33   :  { %1212 = vadd.xlane.f32.xlu1 %v1211_v29 }
 0xd4e   :  { %v1756_v61 = vpop.f32.mrb[16].mxu1 }
 0xd4f   :  { %v1683_v0 = vpop.f32.mrb[12].mxu0  ;;  %v2424_v40 = vpop.f32.mrb[17].mxu1  ;;  %v1856_v53 = vadd.f32 %v1756_v61, %v2672_v7 }
 0xd50   :  { %v2419_v8 = vpop.f32.mrb[13].mxu0  ;;  %v1855_v60 = vadd.f32 %v1683_v0, %v2665_v5 }
 0xd57   :  { %v2435_v42 = vpop.f32.mrb[14].mxu0 }
 0xd58   :  { %v1838_v46 = vadd.f32 %v2435_v42, %v2849_v13  ;;  %v1832_v43 = vpop.f32.mrb[15].mxu0 }
 0xd59   :  { %v1833_v44 = vadd.f32 %v2849_v13, %v1832_v43 }
 0xd5a   :  { %v2258_v45 = vmul.f32 -1.442695, %v1838_v46 }
 0xd5b   :  { %v2257_v47 = vmul.f32 -1.442695, %v1833_v44 }
 0xd5c   :  { %2567 = vpow2.f32 %v2258_v45 }
 0xd5d   :  { %2569 = vpow2.f32 %v2257_v47 }
 0xd66   :  { %v2568_v48 = vpop.eup %2567 }
 0xd67   :  { %v2570_v49 = vpop.eup %2569  ;;  %v1848_v56 = vadd.f32 1.0, %v2568_v48 }
 0xd68   :  { %v1847_v50 = vadd.f32 1.0, %v2570_v49 }
 0xd69   :  { %2571 = vrcp.f32 %v1848_v56 }
 0xd6a   :  { %2573 = vrcp.f32 %v1847_v50 }
 0xd73   :  { %v2572_v51 = vpop.eup %2571 }
 0xd74   :  { %v2574_v52 = vpop.eup %2573  ;;  %v1854_v58 = vmul.f32 %v2572_v51, %v2859_v33 }
 0xd75   :  { %v1853_v13 = vmul.f32 %v2574_v52, %v2863_v39 }
 0xd76   :  { %v2962_v63 = vadd.f32 %v1856_v53, %v1854_v58 }
 0xd77   :  { %v2964_v41 = vadd.f32 %v1855_v60, %v1853_v13 }
 0xdb6   :  { %v537_v36 = vpop.xlane.xlu0 %536 }
 0xdb7   :  { %v538_v2 = vadd.f32 1e-06, %v537_v36 }
 0xdb9   :  { %v540_v3 = vrot.slane %v538_v2, 1  ;;  %2575 = vrcp.f32 %v538_v2 }
 0xdbb   :  { %2577 = vrcp.f32 %v540_v3  ;;  %v1897_v4 = vpop.xlane.xlu1 %1896  ;;  %v2597_v3 = vmov 1966171168  }
 0xdbc   :  { %v1899_v6 = vrot.slane %v1897_v4, 1  ;;  %2579 = vrcp.f32 %v1897_v4  ;;  %v586_v4 = vunpack.c.l.s4 %v2597_v3 }
 0xdbe   :  { %2581 = vrcp.f32 %v1899_v6 }
 0xdc0   :  { %v1213_v7 = vpop.xlane.xlu1 %1212 }
 0xdc1   :  { %v1214_v9 = vadd.f32 1e-06, %v1213_v7 }
 0xdc3   :  { %v2576_v33 = vpop.eup %2575  ;;  %v1216_v10 = vrot.slane %v1214_v9, 1  ;;  %2583 = vrcp.f32 %v1214_v9 }
 0xdc4   :  { %v544_v5 = vmul.f32 %v2576_v33, %v2932_v16  ;;  %v587_v33 = vunpack.c.0.s8 %v586_v4 }
 0xdc5   :  { %v2578_v39 = vpop.eup %2577  ;;  %2585 = vrcp.f32 %v1216_v10 }
 0xdc6   :  { %v2580_v11 = vpop.eup %2579  ;;  %v550_v12 = vrot.slane %v544_v5, %v2708_v34  ;;  %v546_v14 = vmul.f32 %v2578_v39, %v2929_v15  ;;  %581 = vst.msk [vmem:[%s3207_s8] sm:$0x1] %vm579_vm5, %v544_v5 }
 0xdc7   :  { %v1903_v18 = vmul.f32 %v2580_v11, %v2941_v23 }
 0xdc8   :  { %v2582_v17 = vpop.eup %2581  ;;  %552 = vbcast.lane.b32.xlu1 %v550_v12, 256  ;;  %582 = vst.msk [vmem:[%s3207_s8 + $0x2] sm:$0x1] %vm579_vm5, %v546_v14  ;;  %v3013_v12 = vsub.s32 %v587_v33, %v2705_v32  ;;  %vm2033_vm5 = vcmp.lt.s32.totalorder %v307_v30, 120 }
 0xdc9   :  { %v1905_v16 = vmul.f32 %v2582_v17, %v2938_v21  ;;  %v1906_v15 = vmul.f32 %v1903_v18, %v2713_v35 }
 0xdcb   :  { %v2979_v19 = vmul.f32 %v1905_v16, %v2722_v38  ;;  %v557_v38 = vrot.slane %v546_v14, %v2708_v34 }
 0xdcd   :  { %v2584_v20 = vpop.eup %2583  ;;  %v1910_v22 = vrot.slane %v2979_v19, 7 }
 0xdce   :  { %v2984_v59 = vmul.f32 %v2584_v20, %v2950_v27 }
 0xdcf   :  { %v2586_v57 = vpop.eup %2585  ;;  %v1911_v24 = vsel %vm495_vm3, %v1910_v22, %v1906_v15 }
 0xdd0   :  { %v1913_v25 = vsel %vm498_vm4, %v1911_v24, 0.0  ;;  %v1226_v23 = vrot.slane %v2984_v59, %v2708_v34  ;;  %v2991_v21 = vmul.f32 %v2586_v57, %v2947_v26  ;;  %vm1993_vm4 = vmand %vm3115_vm1, %vm3120_vm2 }
 0xdd1   :  { %1914 = vadd.xlane.f32.xlu0 %v1913_v25  ;;  %v1261_v25 = vrot.slane %v2984_v59, %v3013_v12  ;;  %v38_v59 = vld [vmem:[%s3208_s6] sm:$0xff] }
 0xdd2   :  { %1228 = vbcast.lane.b32.xlu1 %v1226_v23, 256  ;;  %v1233_v35 = vrot.slane %v2991_v21, %v2708_v34 }
 0xdd6   :  { %1235 = vbcast.lane.b32.xlu1 %v1233_v35, 256  ;;  %v39_v35 = vld [vmem:[%s3208_s6 + $0x8] sm:$0xff] }
 0xde7   :  { %559 = vbcast.lane.b32.xlu0 %v557_v38, 256  ;;  %v2488_v38 = vpack.c.bf16 %v39_v35, %v38_v59 }
 0xe3a   :  { %v553_v54 = vpop.permute.xlu1 %552 }
 0xe3b   :  { %v561_v44 = vmul.f32 %v553_v54, %v2759_v62  ;;  %v1268_v54 = vrot.slane %v1261_v25, %v3013_v12 }
 0xe44   :  { %v1229_v27 = vpop.permute.xlu1 %1228 }
 0xe45   :  { %v1237_v28 = vmul.f32 %v1229_v27, %v2861_v37  ;;  %v563_v37 = vsel %vm54_vm0, %v561_v44, 0.0  ;;  %v2599_v27 = vmov 0.0|0.0  }
 0xe46   :  { %v564_v56 = vrot.slane %v563_v37, 4  ;;  %2487 = vmatprep.subr.bf16.mxu1 %v2599_v27 }
 0xe47   :  { %v1239_v55 = vsel %vm54_vm0, %v1237_v28, 0.0  ;;  %2489 = vmatpush3.bf16.msra.mxu1 %v2488_v38 }
 0xe48   :  { %v1240_v29 = vrot.slane %v1239_v55, 4  ;;  %v1236_v61 = vpop.permute.xlu1 %1235  ;;  %v565_v52 = vadd.f32 %v564_v56, %v563_v37  ;;  %2490 = vmatprep.subr.bf16.mxu1 %v2599_v27 }
 0xe49   :  { %v1238_v26 = vmul.f32 %v1236_v61, %v2857_v31  ;;  %v41_v61 = vld [vmem:[%s3208_s6 + $0x18] sm:$0xff] }
 0xe4a   :  { %v1241_v0 = vadd.f32 %v1240_v29, %v1239_v55  ;;  %v566_v62 = vrot.slane %v565_v52, 2  ;;  %v40_v29 = vld [vmem:[%s3208_s6 + $0x10] sm:$0xff] }
 0xe4b   :  { %v1246_v40 = vsel %vm54_vm0, %v1238_v26, 0.0  ;;  %v2491_v26 = vpack.c.bf16 %v41_v61, %v40_v29 }
 0xe4c   :  { %v1242_v8 = vrot.slane %v1241_v0, 2  ;;  %v1247_v42 = vrot.slane %v1246_v40, 4  ;;  %v567_v13 = vadd.f32 %v566_v62, %v565_v52 }
 0xe4d   :  { %2492 = vmatpush3.bf16.msra.mxu1 %v2491_v26 }
 0xe4e   :  { %v1243_v46 = vadd.f32 %v1242_v8, %v1241_v0  ;;  %v1248_v43 = vadd.f32 %v1247_v42, %v1246_v40  ;;  %v568_v7 = vrot.slane %v567_v13, 1 }
 0xe50   :  { %v1249_v45 = vrot.slane %v1248_v43, 2  ;;  %v1244_v47 = vrot.slane %v1243_v46, 1  ;;  %v569_v5 = vadd.f32 %v568_v7, %v567_v13 }
 0xe52   :  { %v1250_v48 = vadd.f32 %v1249_v45, %v1248_v43  ;;  %v3002_v50 = vadd.f32 %v1244_v47, %v1243_v46  ;;  %v591_v22 = vrot.slane %v569_v5, %v3013_v12 }
 0xe54   :  { %v1251_v49 = vrot.slane %v1250_v48, 1 }
 0xe56   :  { %v3004_v31 = vadd.f32 %v1251_v49, %v1250_v48 }
 0xe58   :  { %v1335_v51 = vsel %vm495_vm3, %v3004_v31, %v3002_v50  ;;  %v1316_v55 = vrot.slane %v3004_v31, %v3013_v12 }
 0xe59   :  { %1337 = vst.msk [vmem:[#allocation2 + $0x2] sm:$0x3] %vm626_vm6, %v1335_v51 }
 0xe5a   :  { %v1323_v42 = vrot.slane %v1316_v55, %v3013_v12 }
 0xe5e   :  { %v1915_v53 = vpop.xlane.xlu0 %1914 }
 0xe5f   :  { %v1916_v58 = vadd.f32 1e-06, %v1915_v53 }
 0xe61   :  { %v1918_v60 = vrot.slane %v1916_v58, 1  ;;  %2587 = vrcp.f32 %v1916_v58 }
 0xe62   :  { %v560_v36 = vpop.permute.xlu0 %559 }
 0xe63   :  { %2589 = vrcp.f32 %v1918_v60  ;;  %v562_v2 = vmul.f32 %v560_v36, %v2767_v1 }
 0xe65   :  { %v570_v6 = vsel %vm54_vm0, %v562_v2, 0.0 }
 0xe66   :  { %v571_v9 = vrot.slane %v570_v6, 4 }
 0xe68   :  { %v572_v10 = vadd.f32 %v571_v9, %v570_v6 }
 0xe6a   :  { %v573_v39 = vrot.slane %v572_v10, 2 }
 0xe6b   :  { %v2588_v11 = vpop.eup %2587 }
 0xe6c   :  { %v574_v14 = vadd.f32 %v573_v39, %v572_v10  ;;  %v1922_v17 = vmul.f32 %v2588_v11, %v1906_v15  ;;  %v598_v15 = vrot.slane %v591_v22, %v3013_v12 }
 0xe6d   :  { %v2590_v18 = vpop.eup %2589 }
 0xe6e   :  { %v575_v16 = vrot.slane %v574_v14, 1  ;;  %v1928_v1 = vrot.slane %v1922_v17, %v2708_v34  ;;  %v1924_v20 = vmul.f32 %v2590_v18, %v2979_v19  ;;  %v1275_v19 = vrot.slane %v2991_v21, %v3013_v12 }
 0xe6f   :  { %v1302_v21 = vrot.slane %v3002_v50, %v3013_v12  ;;  %v1963_v0 = vrot.slane %v1922_v17, %v3013_v12 }
 0xe70   :  { %v576_v57 = vadd.f32 %v575_v16, %v574_v14  ;;  %1930 = vbcast.lane.b32.xlu1 %v1928_v1, 256  ;;  %v1935_v24 = vrot.slane %v1924_v20, %v2708_v34  ;;  %v1282_v28 = vrot.slane %v1275_v19, %v3013_v12  ;;  %v1977_v8 = vrot.slane %v1924_v20, %v3013_v12 }
 0xe71   :  { %v1309_v40 = vrot.slane %v1302_v21, %v3013_v12  ;;  %v1970_v46 = vrot.slane %v1963_v0, %v3013_v12 }
 0xe72   :  { %v624_v32 = vsel %vm495_vm3, %v576_v57, %v569_v5  ;;  %1937 = vbcast.lane.b32.xlu0 %v1935_v24, 256  ;;  %v605_v23 = vrot.slane %v576_v57, %v3013_v12  ;;  %v1984_v43 = vrot.slane %v1977_v8, %v3013_v12 }
 0xe73   :  { %627 = vst.msk [vmem:[#allocation2] sm:$0x3] %vm626_vm6, %v624_v32 }
 0xe74   :  { %613 = vrot.lane.b32.xlu1 %v598_v15, %s2598_s27  ;;  %v612_v34 = vrot.slane %v605_v23, %v3013_v12  ;;  %v2259_v23 = vld [vmem:[%s3209_s7] ss:$0 sm:$0xff] }
 0xe76   :  { %615 = vrot.lane.b32.xlu0 %v612_v34, %s2598_s27 }
 0xe78   :  { %1283 = vrot.lane.b32.xlu1 %v1268_v54, %s2600_s10 }
 0xe7a   :  { %1285 = vrot.lane.b32.xlu0 %v1282_v28, %s2600_s10 }
 0xe7c   :  { %1324 = vrot.lane.b32.xlu1 %v1309_v40, %s2601_s15 }
 0xe7e   :  { %1326 = vrot.lane.b32.xlu0 %v1323_v42, %s2601_s15 }
 0xe80   :  { %1985 = vrot.lane.b32.xlu1 %v1970_v46, %s2602_s16 }
 0xe82   :  { %1987 = vrot.lane.b32.xlu0 %v1984_v43, %s2602_s16 }
 0xee2   :  { %v1931_v47 = vpop.permute.xlu1 %1930 }
 0xee3   :  { %v1939_v48 = vmul.f32 %v1931_v47, %v2964_v41 }
 0xee4   :  { %v1938_v37 = vpop.permute.xlu0 %1937 }
 0xee5   :  { %v1941_v49 = vsel %vm54_vm0, %v1939_v48, 0.0  ;;  %v1940_v56 = vmul.f32 %v1938_v37, %v2962_v63 }
 0xee6   :  { %v1942_v41 = vrot.slane %v1941_v49, 4  ;;  %v614_v51 = vpop.permute.xlu1 %613 }
 0xee7   :  { %v1948_v52 = vsel %vm54_vm0, %v1940_v56, 0.0  ;;  %622 = vst.msk [vmem:[%s3207_s8] sm:$0x1] %vm621_vm9, %v614_v51 }
 0xee8   :  { %v1943_v62 = vadd.f32 %v1942_v41, %v1941_v49  ;;  %v1949_v63 = vrot.slane %v1948_v52, 4  ;;  %v616_v53 = vpop.permute.xlu0 %615 }
 0xee9   :  { %623 = vst.msk [vmem:[%s3207_s8 + $0x2] sm:$0x1] %vm621_vm9, %v616_v53  ;;  %vm2155_vm9 = vcmask 982016  }
 0xeea   :  { %v1944_v13 = vrot.slane %v1943_v62, 2  ;;  %v1950_v36 = vadd.f32 %v1949_v63, %v1948_v52  ;;  %v1284_v2 = vpop.permute.xlu1 %1283 }
 0xeeb   :  { %1292 = vst.msk [vmem:[%s3207_s8] sm:$0x1] %vm1291_vm12, %v1284_v2 }
 0xeec   :  { %v1945_v3 = vadd.f32 %v1944_v13, %v1943_v62  ;;  %v1951_v4 = vrot.slane %v1950_v36, 2  ;;  %v1286_v6 = vpop.permute.xlu0 %1285 }
 0xeed   :  { %1293 = vst.msk [vmem:[%s3207_s8 + $0x2] sm:$0x1] %vm1291_vm12, %v1286_v6  ;;  %vm2173_vm12 = vmand %vm3074_vm10, %vm3120_vm2 }
 0xeee   :  { %v1946_v33 = vrot.slane %v1945_v3, 1  ;;  %v1952_v10 = vadd.f32 %v1951_v4, %v1950_v36  ;;  %v1325_v5 = vpop.permute.xlu1 %1324  ;;  %vm2206_vm10 = vmand %vm3057_vm7, %vm2205_vm13 }
 0xeef   :  { %1333 = vst.msk [vmem:[%s3207_s8] sm:$0x1] %vm1332_vm15, %v1325_v5 }
 0xef0   :  { %v1947_v39 = vadd.f32 %v1946_v33, %v1945_v3  ;;  %v1953_v11 = vrot.slane %v1952_v10, 1  ;;  %v1327_v14 = vpop.permute.xlu0 %1326 }
 0xef1   :  { %1334 = vst.msk [vmem:[%s3207_s8 + $0x2] sm:$0x1] %vm1332_vm15, %v1327_v14 }
 0xef2   :  { %v1954_v17 = vadd.f32 %v1953_v11, %v1952_v10  ;;  %v1986_v18 = vpop.permute.xlu1 %1985  ;;  %v2004_v16 = vrot.slane %v1947_v39, %v3013_v12 }
 0xef3   :  { %1994 = vst.msk [vmem:[%s3207_s8] sm:$0x1] %vm1993_vm4, %v1986_v18 }
 0xef4   :  { %v2037_v1 = vsel %vm495_vm3, %v1954_v17, %v1947_v39  ;;  %v1988_v20 = vpop.permute.xlu0 %1987  ;;  %v2011_v22 = vrot.slane %v2004_v16, %v3013_v12  ;;  %v2018_v57 = vrot.slane %v1954_v17, %v3013_v12  ;;  %vm2032_vm3 = vcmp.ge.s32.totalorder %v307_v30, 88 }
 0xef5   :  { %2039 = vst.msk [vmem:[#allocation2 + $0x4] sm:$0x3] %vm626_vm6, %v2037_v1  ;;  %vm2034_vm8 = vmand %vm2032_vm3, %vm2033_vm5  ;;  %vm2161_vm6 = vcmp.lt.s32.totalorder %v307_v30, 136 }
 0xef6   :  { %1995 = vst.msk [vmem:[%s3207_s8 + $0x2] sm:$0x1] %vm1993_vm4, %v1988_v20  ;;  %2026 = vrot.lane.b32.xlu1 %v2011_v22, %s2603_s26  ;;  %v2025_v24 = vrot.slane %v2018_v57, %v3013_v12 }
 0xef8   :  { %2028 = vrot.lane.b32.xlu0 %v2025_v24, %s2603_s26 }
 0xefc   :  { %v2040_v25 = vld [vmem:[#allocation2] sm:$0x3f] }
 0xefd   :  { %2445 = vmatmul.mubr.msk.f32.vlgmr.msra.gmra.mrb[18].mxu1 %vm54_vm0, %v2040_v25  ;;  %vm3169_vm0 = vcmp.ge.s32.totalorder %v307_v30, 120 }
 0xefe   :  { %vm2162_vm11 = vmand %vm3169_vm0, %vm2161_vm6 }
 0xf68   :  { %v2027_v32 = vpop.permute.xlu1 %2026 }
 0xf69   :  { %2035 = vst.msk [vmem:[%s3207_s8] sm:$0x1] %vm2034_vm8, %v2027_v32 }
 0xf6a   :  { %v2029_v15 = vpop.permute.xlu0 %2028 }
 0xf6b   :  { %2036 = vst.msk [vmem:[%s3207_s8 + $0x2] sm:$0x1] %vm2034_vm8, %v2029_v15 }
 0xfd0   :  { %v2116_v19 = vpop.f32.mrb[18].mxu1 }
 0xfd1   :  { %v2117_v34 = vadd.f32 %v2259_v23, %v2116_v19  ;;  %v2446_v59 = vpop.f32.mrb[19].mxu1 }
 0xfd3   :  { %v2261_v35 = vmul.f32 -1.442695, %v2117_v34 }
 0xfd5   :  { %2591 = vpow2.f32 %v2261_v35 }
 0xfdf   :  { %v2592_v38 = vpop.eup %2591 }
 0xfe0   :  { %v2123_v54 = vadd.f32 1.0, %v2592_v38 }
 0xfe2   :  { %2593 = vrcp.f32 %v2123_v54 }
 0xfec   :  { %v2594_v21 = vpop.eup %2593 }
 0xfed   :  { %v2133_v27 = vrot.slane %v2594_v21, %v3013_v12  ;;  %v2176_v28 = vcombine.high %v2594_v21, %v2594_v21 }
 0xfef   :  { %v2141_v55 = vrot.slane %v2133_v27, %v3013_v12  ;;  %v2134_v29 = vcombine.high %v2133_v27, %v2133_v27  ;;  %v2183_v26 = vrot.slane %v2176_v28, %v3013_v12 }
 0xff1   :  { %2149 = vrot.lane.b32.xlu1 %v2141_v55, %s2604_s13  ;;  %v2148_v61 = vrot.slane %v2134_v29, %v3013_v12  ;;  %v2165_v0 = vcombine.high %v2141_v55, %v2141_v55  ;;  %v2184_v8 = vcombine.high %v2183_v26, %v2183_v26  ;;  %v2191_v42 = vrot.slane %v2183_v26, %v3013_v12 }
 0xff3   :  { %2151 = vrot.lane.b32.xlu0 %v2148_v61, %s2604_s13  ;;  %v2166_v40 = vcombine.high %v2148_v61, %v2148_v61  ;;  %v2198_v46 = vrot.slane %v2184_v8, %v3013_v12 }
 0xff5   :  { %2167 = vrot.lane.b32.xlu1 %v2165_v0, %s2600_s10 }
 0xff7   :  { %2169 = vrot.lane.b32.xlu0 %v2166_v40, %s2600_s10 }
 0xff9   :  { %2199 = vrot.lane.b32.xlu1 %v2191_v42, %s2598_s27 }
 0xffb   :  { %2201 = vrot.lane.b32.xlu0 %v2198_v46, %s2598_s27 }
0x1063   :  { %v2150_v45 = vpop.permute.xlu1 %2149 }
0x1064   :  { %v2153_v47 = vrot.slane %v2150_v45, 7 }
0x1065   :  { %v2152_v48 = vpop.permute.xlu0 %2151 }
0x1066   :  { %v2156_v12 = vsel %vm2155_vm9, %v2153_v47, %v2150_v45  ;;  %v2154_v37 = vrot.slane %v2152_v48, 7 }
0x1067   :  { %2163 = vst.msk [vmem:[%s3207_s8] sm:$0x3] %vm2162_vm11, %v2156_v12  ;;  %v2168_v49 = vpop.permute.xlu1 %2167 }
0x1068   :  { %v2157_v56 = vsel %vm2155_vm9, %v2154_v37, %v2152_v48  ;;  %2174 = vst.msk [vmem:[%s3207_s8 + $0x1] sm:$0x1] %vm2173_vm12, %v2168_v49 }
0x1069   :  { %2164 = vst.msk [vmem:[%s3207_s8 + $0x2] sm:$0x3] %vm2162_vm11, %v2157_v56  ;;  %v2170_v50 = vpop.permute.xlu0 %2169 }
0x106a   :  { %2175 = vst.msk [vmem:[%s3207_s8 + $0x3] sm:$0x1] %vm2173_vm12, %v2170_v50 }
0x106b   :  { %v2200_v30 = vpop.permute.xlu1 %2199 }
0x106c   :  { %2207 = vst.msk [vmem:[%s3207_s8 + $0x1] sm:$0x1] %vm2206_vm10, %v2200_v30 }
0x106d   :  { %v2202_v31 = vpop.permute.xlu0 %2201 }
0x106e   :  { %2208 = vst.msk [vmem:[%s3207_s8 + $0x3] sm:$0x1] %vm2206_vm10, %v2202_v31 }

</bundles_post_ra>
